<compile_context>
chip_gen: v7x
topology: tpu7x:2x2x1
jax: 0.10.0
libtpu: 0.0.40
codegen_flags: <defaults>
</compile_context>

<pallas_src>
import math

import numpy as np
import jax
import jax.numpy as jnp
from jax.experimental import pallas as pl
from jax.experimental.pallas import tpu as pltpu

_MASK_VAL = -1e30   # large-but-safe "minus inf" (avoids -float32.max overflow downstream)


# ----------------------------------------------------------------------------- block-spec helpers
def _const_spec(shape):
    """Whole-array block, same block for every grid step (weights stay VMEM resident)."""
    nd = len(shape)
    return pl.BlockSpec(tuple(shape), lambda *_: (0,) * nd)


def _batch_spec(shape):
    """Block over the leading (batch) dim, full extent on the trailing dims."""
    nd = len(shape)
    blk = (1,) + tuple(shape[1:])
    return pl.BlockSpec(blk, lambda b, _nd=nd: (b,) + (0,) * (_nd - 1))


# ----------------------------------------------------------------------------- in-kernel math helpers
def _layernorm(x, g, b, eps=1e-5):
    mu = jnp.mean(x, axis=-1, keepdims=True)
    xc = x - mu
    var = jnp.mean(xc * xc, axis=-1, keepdims=True)
    return xc * jax.lax.rsqrt(var + eps) * g + b


def _gelu(x):
    # tanh-approx GELU (runs on the EUP); within ~1e-3 of PyTorch's exact erf GELU.
    c = 0.7978845608028654  # sqrt(2/pi)
    return 0.5 * x * (1.0 + jnp.tanh(c * (x + 0.044715 * x * x * x)))


def _mha_heads_proj(q, k, v, mask_add, n_heads, wo, bo):
    """Multi-head attention on VMEM-resident 2D tiles.

    q:(Lq,D) k,v:(Lk,D), mask_add additive (broadcastable to (Lq,Lk)) or None.
    Heads are static lane slices; the output projection is accumulated per head
    (concat(heads) @ wo == sum_h head_h @ wo[h*dh:(h+1)*dh]), so no lane concat is needed.
    """
    _, D = q.shape
    dh = D // n_heads
    scale = 1.0 / math.sqrt(dh)
    out = None
    for h in range(n_heads):
        sl = slice(h * dh, (h + 1) * dh)
        s = jax.lax.dot_general(q[:, sl], k[:, sl], (((1,), (1,)), ((), ())),
                                preferred_element_type=jnp.float32) * scale
        if mask_add is not None:
            s = s + mask_add
        s = s - jnp.max(s, axis=-1, keepdims=True)
        p = jnp.exp(s)
        p = p / jnp.sum(p, axis=-1, keepdims=True)
        oh = jnp.dot(p, v[:, sl], preferred_element_type=jnp.float32)          # (Lq, dh)
        contrib = jnp.dot(oh, wo[sl, :], preferred_element_type=jnp.float32)   # (Lq, D)
        out = contrib if out is None else out + contrib
    return out + bo


# ----------------------------------------------------------------------------- fused GEN layer kernel
def _make_gen_kernel(has_lin):
    def kernel(*refs):
        x_ref, srcc_ref, dstc_ref, dstr_ref, ea_ref = refs[:5]
        rest = refs[5:]
        if has_lin:
            lsw, lsb, ldw, ldb = rest[:4]
            rest = rest[4:]
        lew, leb, t_ref, w1, b1, w2, b2, g_ref, beta_ref, o_ref = rest

        x = x_ref[...]
        if has_lin:
            x_src = jnp.dot(x, lsw[...], preferred_element_type=jnp.float32) + lsb[...]
            x_dst = jnp.dot(x, ldw[...], preferred_element_type=jnp.float32) + ldb[...]
        else:
            x_src = x
            x_dst = x
        e = jnp.dot(ea_ref[...], lew[...], preferred_element_type=jnp.float32) + leb[...]   # (E, D)

        E = srcc_ref.shape[0]
        N = x.shape[0]
        # one-hot gather/scatter built in-VMEM from int32 index vectors (no (E,N) HBM traffic)
        # TODO(synk): for production-scale graphs (N~1k, E~10k) replace the in-kernel one-hot
        # matmuls with scalar-prefetch indexed DMA gather + scatter-accumulate tiling over E.
        iota_en = jax.lax.broadcasted_iota(jnp.int32, (E, N), 1)
        oh_src = (srcc_ref[...] == iota_en).astype(jnp.float32)        # (E, N): src one-hot
        oh_dst = (dstc_ref[...] == iota_en).astype(jnp.float32)        # (E, N): dst one-hot
        iota_ne = jax.lax.broadcasted_iota(jnp.int32, (N, E), 0)
        oh_dst_t = (dstr_ref[...] == iota_ne).astype(jnp.float32)      # (N, E)

        gathered = jnp.dot(oh_src, x_src, preferred_element_type=jnp.float32)  # x_src[src]
        msg = jnp.maximum(gathered + e, 0.0) + 1e-7                             # GENConv message
        scaled = msg * t_ref[...]

        # softmax aggregation per destination node (GENConv aggr='softmax').  The stability
        # shift uses the global max, which is mathematically identical to PyG's per-segment
        # max shift (softmax is shift invariant within each segment) and keeps the fused
        # kernel to plain 2D reductions.
        m = jnp.max(jnp.max(scaled, axis=-1, keepdims=True), axis=0, keepdims=True)
        w = jnp.exp(scaled - m)
        denom = jnp.dot(oh_dst_t, w, preferred_element_type=jnp.float32)        # per-dst sums (N, D)
        denom_e = jnp.dot(oh_dst, denom, preferred_element_type=jnp.float32)    # gathered back (E, D)
        alpha = w / (denom_e + 1e-16)
        aggr = jnp.dot(oh_dst_t, alpha * msg, preferred_element_type=jnp.float32)  # (N, D)

        out = aggr + x_dst
        # GENConv MLP: Linear -> BatchNorm(eval stats folded into w1) -> ReLU -> Linear
        h = jnp.maximum(jnp.dot(out, w1[...], preferred_element_type=jnp.float32) + b1[...], 0.0)
        out = jnp.dot(h, w2[...], preferred_element_type=jnp.float32) + b2[...]
        # MultiHeadGENLayer: LayerNorm + ELU (dropout = eval identity)
        y = _layernorm(out, g_ref[...], beta_ref[...])
        o_ref[...] = jnp.where(y > 0.0, y, jnp.exp(jnp.minimum(y, 0.0)) - 1.0)
        # TODO(synk): edge_mlp branch of MultiHeadGENLayer is skipped -- its output is discarded
        # by AutoregressiveDecoder.forward (only node features are threaded through).
    return kernel


def gen_layer(x, srcc, dstc, dstr, edge_attr, lp):
    N = x.shape[0]
    D = lp["ln_g"].shape[-1]
    has_lin = "lin_src_w" in lp
    ins = [x, srcc, dstc, dstr, edge_attr]
    if has_lin:
        ins += [lp["lin_src_w"], lp["lin_src_b"], lp["lin_dst_w"], lp["lin_dst_b"]]
    ins += [lp["lin_edge_w"], lp["lin_edge_b"], lp["t"],
            lp["mlp_w1"], lp["mlp_b1"], lp["mlp_w2"], lp["mlp_b2"], lp["ln_g"], lp["ln_b"]]
    return pl.pallas_call(
        _make_gen_kernel(has_lin),
        grid=(1,),
        in_specs=[_const_spec(a.shape) for a in ins],
        out_specs=_const_spec((N, D)),
        out_shape=jax.ShapeDtypeStruct((N, D), jnp.float32),
        compiler_params=pltpu.CompilerParams(dimension_semantics=("arbitrary",)),
    )(*ins)


# ----------------------------------------------------------------------------- fused transformer decoder
_DEC_WNAMES = ["sa_wqkv", "sa_bqkv", "sa_wo", "sa_bo",
               "ca_wq", "ca_bq", "ca_wkv", "ca_bkv", "ca_wo", "ca_bo",
               "ff_w1", "ff_b1", "ff_w2", "ff_b2",
               "ln1_g", "ln1_b", "ln2_g", "ln2_b", "ln3_g", "ln3_b"]


def _make_decoder_kernel(n_layers, n_heads, d_model):
    D = d_model

    def kernel(hist_ref, mem_ref, sr_ref, kp_ref, hw_ref, hb_ref,
               sa_wqkv, sa_bqkv, sa_wo, sa_bo,
               ca_wq, ca_bq, ca_wkv, ca_bkv, ca_wo, ca_bo,
               ff_w1, ff_b1, ff_w2, ff_b2,
               ln1_g, ln1_b, ln2_g, ln2_b, ln3_g, ln3_b,
               norm_g, norm_b, o_ref):
        hist = hist_ref[0]                       # (S, F)
        mem = mem_ref[0]                         # (Lm, D)
        S = hist.shape[0]

        # history embedding (nn.Linear) fused in
        x = jnp.dot(hist, hw_ref[...], preferred_element_type=jnp.float32) + hb_ref[...]   # (S, D)

        # additive self-attention mask: causal (triu) + key padding, shared by all heads/layers
        rows = jax.lax.broadcasted_iota(jnp.int32, (S, S), 0)
        cols = jax.lax.broadcasted_iota(jnp.int32, (S, S), 1)
        self_mask = jnp.where(cols > rows, jnp.float32(_MASK_VAL), jnp.float32(0.0)) + kp_ref[0]

        for l in range(n_layers):                # norm_first=False, activation=gelu, eval dropout
            qkv = jnp.dot(x, sa_wqkv[l], preferred_element_type=jnp.float32) + sa_bqkv[l]   # (S, 3D)
            sa = _mha_heads_proj(qkv[:, :D], qkv[:, D:2 * D], qkv[:, 2 * D:],
                                 self_mask, n_heads, sa_wo[l], sa_bo[l])
            x = _layernorm(x + sa, ln1_g[l], ln1_b[l])

            qc = jnp.dot(x, ca_wq[l], preferred_element_type=jnp.float32) + ca_bq[l]        # (S, D)
            kv = jnp.dot(mem, ca_wkv[l], preferred_element_type=jnp.float32) + ca_bkv[l]    # (Lm, 2D)
            ca = _mha_heads_proj(qc, kv[:, :D], kv[:, D:], None, n_heads, ca_wo[l], ca_bo[l])
            x = _layernorm(x + ca, ln2_g[l], ln2_b[l])

            h = _gelu(jnp.dot(x, ff_w1[l], preferred_element_type=jnp.float32) + ff_b1[l])
            h = jnp.dot(h, ff_w2[l], preferred_element_type=jnp.float32) + ff_b2[l]
            x = _layernorm(x + h, ln3_g[l], ln3_b[l])

        # final context embedding: norm(last_decoder_output + step_emb + remaining_emb)
        last = x[S - 1:S, :] + sr_ref[0]
        o_ref[0] = _layernorm(last, norm_g[...], norm_b[...])
    return kernel


def transformer_decoder(hist, memory, step_rem, key_pad_add, prep, n_heads, n_layers):
    B = hist.shape[0]
    D = memory.shape[-1]
    consts = [prep["hist_w"], prep["hist_b"]] + [prep["dec"][n] for n in _DEC_WNAMES] \
        + [prep["norm_g"], prep["norm_b"]]
    ins = [hist, memory, step_rem, key_pad_add] + consts
    in_specs = [_batch_spec(hist.shape), _batch_spec(memory.shape),
                _batch_spec(step_rem.shape), _batch_spec(key_pad_add.shape)] \
        + [_const_spec(a.shape) for a in consts]
    return pl.pallas_call(
        _make_decoder_kernel(n_layers, n_heads, D),
        grid=(B,),
        in_specs=in_specs,
        out_specs=_batch_spec((B, 1, D)),
        out_shape=jax.ShapeDtypeStruct((B, 1, D), jnp.float32),
        compiler_params=pltpu.CompilerParams(dimension_semantics=("parallel",)),
    )(*ins)


# ----------------------------------------------------------------------------- fused heads
def _make_head_attn_kernel(n_heads):
    def kernel(ctx_ref, nodes_ref, kmask_ref, wq, bq, wkv, bkv, wo, bo,
               sw1, sb1, sw2, sb2, attn_ref, spec_ref):
        ctx = ctx_ref[0]                       # (1, D)
        nodes = nodes_ref[0]                   # (Mn, D)
        kmask = kmask_ref[0]                   # (1, Mn) additive key-padding mask
        D = ctx.shape[-1]
        q = jnp.dot(ctx, wq[...], preferred_element_type=jnp.float32) + bq[...]
        kv = jnp.dot(nodes, wkv[...], preferred_element_type=jnp.float32) + bkv[...]   # (Mn, 2D)
        attn_ref[0] = _mha_heads_proj(q, kv[:, :D], kv[:, D:], kmask, n_heads, wo[...], bo[...])
        # special_action_head (Linear -> GELU -> Linear) fused in
        hsp = _gelu(jnp.dot(ctx, sw1[...], preferred_element_type=jnp.float32) + sb1[...])
        spec_ref[0] = jnp.dot(hsp, sw2[...], preferred_element_type=jnp.float32) + sb2[...]
    return kernel


def node_attention_and_special(ctx3, padded_nodes, kmask3, prep, n_heads):
    B, _, D = ctx3.shape
    consts = [prep["na_wq"], prep["na_bq"], prep["na_wkv"], prep["na_bkv"],
              prep["na_wo"], prep["na_bo"],
              prep["sa_w1"], prep["sa_b1"], prep["sa_w2"], prep["sa_b2"]]
    ins = [ctx3, padded_nodes, kmask3] + consts
    in_specs = [_batch_spec(ctx3.shape), _batch_spec(padded_nodes.shape),
                _batch_spec(kmask3.shape)] + [_const_spec(a.shape) for a in consts]
    attn, spec = pl.pallas_call(
        _make_head_attn_kernel(n_heads),
        grid=(B,),
        in_specs=in_specs,
        out_specs=(_batch_spec((B, 1, D)), _batch_spec((B, 1, 2))),
        out_shape=(jax.ShapeDtypeStruct((B, 1, D), jnp.float32),
                   jax.ShapeDtypeStruct((B, 1, 2), jnp.float32)),
        compiler_params=pltpu.CompilerParams(dimension_semantics=("parallel",)),
    )(*ins)
    return attn[:, 0, :], spec[:, 0, :]


def _node_score_kernel(g_ref, a_ref, w1g, w1a, b1, w2, b2, o_ref):
    g = g_ref[...]
    a = a_ref[...]
    gn = g / jnp.maximum(jnp.sqrt(jnp.sum(g * g, axis=-1, keepdims=True)), 1e-12)   # F.normalize
    an = a / jnp.maximum(jnp.sqrt(jnp.sum(a * a, axis=-1, keepdims=True)), 1e-12)
    # concat([gn, an]) @ W1 == gn @ W1[:D] + an @ W1[D:]  (W1 pre-split at prepare time)
    h = _gelu(jnp.dot(gn, w1g[...], preferred_element_type=jnp.float32)
              + jnp.dot(an, w1a[...], preferred_element_type=jnp.float32) + b1[...])
    o_ref[...] = jnp.dot(h, w2[...], preferred_element_type=jnp.float32) + b2[...]


def node_score_head(gemb, attn_pn, prep):
    N = gemb.shape[0]
    ins = [gemb, attn_pn, prep["ns_w1g"], prep["ns_w1a"], prep["ns_b1"], prep["ns_w2"], prep["ns_b2"]]
    return pl.pallas_call(
        _node_score_kernel,
        grid=(1,),
        in_specs=[_const_spec(a.shape) for a in ins],
        out_specs=_const_spec((N, 1)),
        out_shape=jax.ShapeDtypeStruct((N, 1), jnp.float32),
        compiler_params=pltpu.CompilerParams(dimension_semantics=("arbitrary",)),
    )(*ins)


# ----------------------------------------------------------------------------- parameters
def _glorot(key, shape):
    lim = math.sqrt(6.0 / (shape[0] + shape[-1]))
    return jax.random.uniform(key, shape, jnp.float32, -lim, lim)


def init_params(key, feat_dim, D, n_heads, n_layers, max_seq_len):
    keys = iter(jax.random.split(key, 256))
    nk = lambda: next(keys)
    P = {"step_emb": jax.random.normal(nk(), (max_seq_len, D), jnp.float32) * 0.1,
         "rem_emb": jax.random.normal(nk(), (max_seq_len + 1, D), jnp.float32) * 0.1}

    bn_scale = 1.0 / math.sqrt(1.0 + 1e-5)   # eval BatchNorm (running mean 0 / var 1) folded into mlp_w1
    gat = []
    for i in range(3):
        in_dim = feat_dim if i == 0 else D
        lp = {"lin_edge_w": _glorot(nk(), (2, D)), "lin_edge_b": jnp.zeros(D),
              "t": jnp.float32(1.0),
              "mlp_w1": _glorot(nk(), (D, 2 * D)) * bn_scale, "mlp_b1": jnp.zeros(2 * D),
              "mlp_w2": _glorot(nk(), (2 * D, D)), "mlp_b2": jnp.zeros(D),
              "ln_g": jnp.ones(D), "ln_b": jnp.zeros(D)}
        if in_dim != D:
            lp["lin_src_w"] = _glorot(nk(), (in_dim, D)); lp["lin_src_b"] = jnp.zeros(D)
            lp["lin_dst_w"] = _glorot(nk(), (in_dim, D)); lp["lin_dst_b"] = jnp.zeros(D)
        gat.append(lp)
    P["gat"] = gat

    def mha():
        return {"wq": _glorot(nk(), (D, D)), "bq": jnp.zeros(D),
                "wk": _glorot(nk(), (D, D)), "bk": jnp.zeros(D),
                "wv": _glorot(nk(), (D, D)), "bv": jnp.zeros(D),
                "wo": _glorot(nk(), (D, D)), "bo": jnp.zeros(D)}

    P["dec_layers"] = [{
        "self_attn": mha(), "cross_attn": mha(),
        "ff_w1": _glorot(nk(), (D, 4 * D)), "ff_b1": jnp.zeros(4 * D),
        "ff_w2": _glorot(nk(), (4 * D, D)), "ff_b2": jnp.zeros(D),
        "ln1_g": jnp.ones(D), "ln1_b": jnp.zeros(D),
        "ln2_g": jnp.ones(D), "ln2_b": jnp.zeros(D),
        "ln3_g": jnp.ones(D), "ln3_b": jnp.zeros(D)} for _ in range(n_layers)]

    P["norm_g"] = jnp.ones(D); P["norm_b"] = jnp.zeros(D)
    P["hist_w"] = _glorot(nk(), (feat_dim, D)); P["hist_b"] = jnp.zeros(D)
    P["node_attn"] = mha()
    P["ns_w1"] = _glorot(nk(), (2 * D, D)); P["ns_b1"] = jnp.zeros(D)
    P["ns_w2"] = _glorot(nk(), (D, 1)); P["ns_b2"] = jnp.zeros(1)
    P["sa_w1"] = _glorot(nk(), (D, D // 2)); P["sa_b1"] = jnp.zeros(D // 2)
    P["sa_w2"] = _glorot(nk(), (D // 2, 2)); P["sa_b2"] = jnp.zeros(2)
    return P


def prepare_params(P):
    """One-time cast/reshape/stack of parameters into kernel-ready layout (hoisted out of wrappers)."""
    D = P["norm_g"].shape[0]
    f32 = lambda a: jnp.asarray(a, jnp.float32)
    row = lambda a: jnp.asarray(a, jnp.float32).reshape(1, -1)

    prep = {"step_emb": f32(P["step_emb"]), "rem_emb": f32(P["rem_emb"]),
            "hist_w": f32(P["hist_w"]), "hist_b": row(P["hist_b"]),
            "norm_g": row(P["norm_g"]), "norm_b": row(P["norm_b"])}

    gat = []
    for lp in P["gat"]:
        g = {"lin_edge_w": f32(lp["lin_edge_w"]), "lin_edge_b": row(lp["lin_edge_b"]),
             "t": f32(lp["t"]).reshape(1, 1),
             "mlp_w1": f32(lp["mlp_w1"]), "mlp_b1": row(lp["mlp_b1"]),
             "mlp_w2": f32(lp["mlp_w2"]), "mlp_b2": row(lp["mlp_b2"]),
             "ln_g": row(lp["ln_g"]), "ln_b": row(lp["ln_b"])}
        if "lin_src_w" in lp:
            g["lin_src_w"] = f32(lp["lin_src_w"]); g["lin_src_b"] = row(lp["lin_src_b"])
            g["lin_dst_w"] = f32(lp["lin_dst_w"]); g["lin_dst_b"] = row(lp["lin_dst_b"])
        gat.append(g)
    prep["gat"] = gat

    def stack(fn):
        return jnp.stack([f32(fn(l)) for l in P["dec_layers"]], axis=0)

    prep["dec"] = {
        "sa_wqkv": stack(lambda l: jnp.concatenate(
            [l["self_attn"]["wq"], l["self_attn"]["wk"], l["self_attn"]["wv"]], axis=1)),
        "sa_bqkv": stack(lambda l: jnp.concatenate(
            [l["self_attn"]["bq"], l["self_attn"]["bk"], l["self_attn"]["bv"]]).reshape(1, -1)),
        "sa_wo": stack(lambda l: l["self_attn"]["wo"]),
        "sa_bo": stack(lambda l: l["self_attn"]["bo"].reshape(1, -1)),
        "ca_wq": stack(lambda l: l["cross_attn"]["wq"]),
        "ca_bq": stack(lambda l: l["cross_attn"]["bq"].reshape(1, -1)),
        "ca_wkv": stack(lambda l: jnp.concatenate(
            [l["cross_attn"]["wk"], l["cross_attn"]["wv"]], axis=1)),
        "ca_bkv": stack(lambda l: jnp.concatenate(
            [l["cross_attn"]["bk"], l["cross_attn"]["bv"]]).reshape(1, -1)),
        "ca_wo": stack(lambda l: l["cross_attn"]["wo"]),
        "ca_bo": stack(lambda l: l["cross_attn"]["bo"].reshape(1, -1)),
        "ff_w1": stack(lambda l: l["ff_w1"]),
        "ff_b1": stack(lambda l: l["ff_b1"].reshape(1, -1)),
        "ff_w2": stack(lambda l: l["ff_w2"]),
        "ff_b2": stack(lambda l: l["ff_b2"].reshape(1, -1)),
        "ln1_g": stack(lambda l: l["ln1_g"].reshape(1, -1)),
        "ln1_b": stack(lambda l: l["ln1_b"].reshape(1, -1)),
        "ln2_g": stack(lambda l: l["ln2_g"].reshape(1, -1)),
        "ln2_b": stack(lambda l: l["ln2_b"].reshape(1, -1)),
        "ln3_g": stack(lambda l: l["ln3_g"].reshape(1, -1)),
        "ln3_b": stack(lambda l: l["ln3_b"].reshape(1, -1)),
    }

    na = P["node_attn"]
    prep["na_wq"] = f32(na["wq"]); prep["na_bq"] = row(na["bq"])
    prep["na_wkv"] = f32(jnp.concatenate([na["wk"], na["wv"]], axis=1))
    prep["na_bkv"] = row(jnp.concatenate([na["bk"], na["bv"]]))
    prep["na_wo"] = f32(na["wo"]); prep["na_bo"] = row(na["bo"])
    prep["sa_w1"] = f32(P["sa_w1"]); prep["sa_b1"] = row(P["sa_b1"])
    prep["sa_w2"] = f32(P["sa_w2"]); prep["sa_b2"] = row(P["sa_b2"])
    prep["ns_w1g"] = f32(P["ns_w1"][:D]); prep["ns_w1a"] = f32(P["ns_w1"][D:])
    prep["ns_b1"] = row(P["ns_b1"]); prep["ns_w2"] = f32(P["ns_w2"]); prep["ns_b2"] = row(P["ns_b2"])
    # TODO(synk): at production sizes cast matmul operands to bf16 (f32 accum) for v6e/v7x MXU.
    return prep


# ----------------------------------------------------------------------------- full forward
def decoder_forward(prep, obs, cfg):
    D = cfg["embedding_dim"]; n_heads = cfg["n_heads"]
    Pn = cfg["p_net_num_nodes"]; n_layers = cfg["n_layers"]

    node_x = jnp.asarray(obs["p_net_x"], jnp.float32)
    edge_attr = jnp.asarray(obs["edge_attr"], jnp.float32)
    src = np.asarray(obs["edge_index"][0], np.int32)
    dst = np.asarray(obs["edge_index"][1], np.int32)
    node_batch = np.asarray(obs["node_batch"], np.int32)
    B = int(obs["num_graphs"])
    N_total, E = node_x.shape[0], src.shape[0]

    # edge index vectors for the in-kernel one-hot gather/scatter (no dense (E,N) HBM tensors)
    srcc = jnp.asarray(src.reshape(E, 1))
    dstc = jnp.asarray(dst.reshape(E, 1))
    dstr = jnp.asarray(dst.reshape(1, E))

    # --- 3 fused GEN layers (one pallas_call each) ---
    x = node_x
    for lp in prep["gat"]:
        x = gen_layer(x, srcc, dstc, dstr, edge_attr, lp)
    graph_embedding = x                                   # gat_projection = Identity

    # --- fused transformer decoder (single pallas_call, grid over batch) ---
    hist = jnp.asarray(obs["history_features"], jnp.float32)     # (B, S, F)
    S = hist.shape[1]
    memory = jnp.asarray(obs["encoder_outputs"], jnp.float32)    # (B, Lm, D)
    step_rem = (prep["step_emb"][obs["curr_v_node_id"]]
                + prep["rem_emb"][obs["vnfs_remaining"]]).reshape(B, 1, D)
    key_pad_add = jnp.where(jnp.all(hist == 0.0, axis=-1),
                            jnp.float32(_MASK_VAL), jnp.float32(0.0)).reshape(B, 1, S)
    ctx3 = transformer_decoder(hist, memory, step_rem, key_pad_add, prep, n_heads, n_layers)

    # --- per-graph node padding: single vectorized scatter (no python .at loops) ---
    counts = np.bincount(node_batch, minlength=B)
    max_nodes = int(counts.max())
    offsets = np.concatenate([[0], np.cumsum(counts)[:-1]]).astype(np.int64)
    pos = np.arange(N_total) - offsets[node_batch]               # position within own graph
    flat = (node_batch * max_nodes + pos).astype(np.int32)
    padded_nodes = jnp.zeros((B * max_nodes, D), jnp.float32) \
        .at[jnp.asarray(flat)].set(graph_embedding).reshape(B, max_nodes, D)
    pad_mask = np.ones((B, max_nodes), bool)
    pad_mask[node_batch, pos] = False
    kmask3 = jnp.asarray(np.where(pad_mask, _MASK_VAL, 0.0).astype(np.float32)).reshape(B, 1, max_nodes)

    # --- node cross-attention + special-action head (one fused pallas_call) ---
    attn_ctx, special = node_attention_and_special(ctx3, padded_nodes, kmask3, prep, n_heads)

    # --- node score head (one fused pallas_call) ---
    attn_per_node = attn_ctx[jnp.asarray(node_batch)]            # (N_total, D)
    node_scores = node_score_head(graph_embedding, attn_per_node, prep)[:, 0]

    # --- logits assembly + clamp + action mask: tiny lane-sparse tail kept in plain jnp ---
    valid = pos < Pn
    flat_lg = (node_batch * Pn + pos)[valid].astype(np.int32)
    take = np.nonzero(valid)[0].astype(np.int32)
    raw_nodes = jnp.full((B * Pn,), -20.0, jnp.float32) \
        .at[jnp.asarray(flat_lg)].set(node_scores[jnp.asarray(take)])
    raw = jnp.concatenate([raw_nodes.reshape(B, Pn), special], axis=1)
    safe = jnp.clip(raw, -15.0, 15.0)
    mask = jnp.asarray(obs["action_mask"]) > 0.5
    # temperature attr is absent (T == 1.0) -> no rescale; masked actions use -1e30 (safe "-inf")
    return jnp.where(mask, safe, jnp.float32(_MASK_VAL))


# ----------------------------------------------------------------------------- main
if __name__ == "__main__":
    B, n_nodes, feat_dim = 2, 12, 8
    D, n_heads, n_layers = 32, 4, 2
    max_seq_len, S, Lm = 8, 6, 5
    P_nodes = n_nodes
    cfg = dict(embedding_dim=D, n_heads=n_heads, n_layers=n_layers, p_net_num_nodes=P_nodes)

    # bidirectional ring graph per batch element
    src_l, dst_l = [], []
    for g in range(B):
        off = g * n_nodes
        for i in range(n_nodes):
            j = (i + 1) % n_nodes
            src_l += [off + i, off + j]
            dst_l += [off + j, off + i]
    edge_index = np.stack([np.array(src_l, np.int32), np.array(dst_l, np.int32)])
    E = edge_index.shape[1]
    node_batch = np.repeat(np.arange(B), n_nodes).astype(np.int32)
    N_total = B * n_nodes

    key = jax.random.PRNGKey(0)
    k = jax.random.split(key, 8)
    node_x = jax.random.normal(k[0], (N_total, feat_dim), jnp.float32)
    edge_attr = jax.random.normal(k[1], (E, 2), jnp.float32)
    hist = jax.random.normal(k[2], (B, S, feat_dim), jnp.float32)
    hist = hist.at[0, -1].set(0.0)                    # exercise tgt_key_padding_mask
    enc = jax.random.normal(k[3], (B, Lm, D), jnp.float32)
    curr_v = jnp.array([1, 3], jnp.int32)
    vnfs_rem = jnp.array([4, 2], jnp.int32)
    amask = np.ones((B, P_nodes + 2), np.float32)
    amask[0, 5] = 0.0
    amask[1, P_nodes] = 0.0                           # mask revoke for graph 1

    obs = dict(p_net_x=node_x, edge_index=edge_index, edge_attr=edge_attr,
               node_batch=node_batch, num_graphs=B,
               history_features=hist, encoder_outputs=enc,
               curr_v_node_id=curr_v, vnfs_remaining=vnfs_rem,
               action_mask=jnp.asarray(amask))

    params = init_params(jax.random.PRNGKey(42), feat_dim, D, n_heads, n_layers, max_seq_len)
    prep = prepare_params(params)

    logits = decoder_forward(prep, obs, cfg)
    logits = jax.block_until_ready(logits)
    assert logits.shape == (B, P_nodes + 2)
    assert bool(jnp.all(jnp.isfinite(logits)))
    print("KERNEL_OK")
</pallas_src>

<mosaic_0001>
module attributes {stable_mosaic.version = 11 : i64} {
  func.func @kernel(%arg0: i32, %arg1: memref<24x8xf32, #tpu.memory_space<vmem>>, %arg2: memref<48x1xi32, #tpu.memory_space<vmem>>, %arg3: memref<48x1xi32, #tpu.memory_space<vmem>>, %arg4: memref<1x48xi32, #tpu.memory_space<vmem>>, %arg5: memref<48x2xf32, #tpu.memory_space<vmem>>, %arg6: memref<8x32xf32, #tpu.memory_space<vmem>>, %arg7: memref<1x32xf32, #tpu.memory_space<vmem>>, %arg8: memref<8x32xf32, #tpu.memory_space<vmem>>, %arg9: memref<1x32xf32, #tpu.memory_space<vmem>>, %arg10: memref<2x32xf32, #tpu.memory_space<vmem>>, %arg11: memref<1x32xf32, #tpu.memory_space<vmem>>, %arg12: memref<1x1xf32, #tpu.memory_space<vmem>>, %arg13: memref<32x64xf32, #tpu.memory_space<vmem>>, %arg14: memref<1x64xf32, #tpu.memory_space<vmem>>, %arg15: memref<64x32xf32, #tpu.memory_space<vmem>>, %arg16: memref<1x32xf32, #tpu.memory_space<vmem>>, %arg17: memref<1x32xf32, #tpu.memory_space<vmem>>, %arg18: memref<1x32xf32, #tpu.memory_space<vmem>>, %arg19: memref<24x32xf32, #tpu.memory_space<vmem>>) attributes {dimension_semantics = [#tpu.dimension_semantics<arbitrary>], iteration_bounds = array<i64: 1>, scalar_prefetch = 0 : i64, scratch_operands = 0 : i64, tpu.core_type = #tpu.core_type<tc>, window_params = [{pipeline_mode = #tpu.pipeline_mode<synchronous>, transform_indices = @transform_0, window_bounds = array<i64: 24, 8>}, {pipeline_mode = #tpu.pipeline_mode<synchronous>, transform_indices = @transform_1, window_bounds = array<i64: 48, 1>}, {pipeline_mode = #tpu.pipeline_mode<synchronous>, transform_indices = @transform_2, window_bounds = array<i64: 48, 1>}, {pipeline_mode = #tpu.pipeline_mode<synchronous>, transform_indices = @transform_3, window_bounds = array<i64: 1, 48>}, {pipeline_mode = #tpu.pipeline_mode<synchronous>, transform_indices = @transform_4, window_bounds = array<i64: 48, 2>}, {pipeline_mode = #tpu.pipeline_mode<synchronous>, transform_indices = @transform_5, window_bounds = array<i64: 8, 32>}, {pipeline_mode = #tpu.pipeline_mode<synchronous>, transform_indices = @transform_6, window_bounds = array<i64: 1, 32>}, {pipeline_mode = #tpu.pipeline_mode<synchronous>, transform_indices = @transform_7, window_bounds = array<i64: 8, 32>}, {pipeline_mode = #tpu.pipeline_mode<synchronous>, transform_indices = @transform_8, window_bounds = array<i64: 1, 32>}, {pipeline_mode = #tpu.pipeline_mode<synchronous>, transform_indices = @transform_9, window_bounds = array<i64: 2, 32>}, {pipeline_mode = #tpu.pipeline_mode<synchronous>, transform_indices = @transform_10, window_bounds = array<i64: 1, 32>}, {pipeline_mode = #tpu.pipeline_mode<synchronous>, transform_indices = @transform_11, window_bounds = array<i64: 1, 1>}, {pipeline_mode = #tpu.pipeline_mode<synchronous>, transform_indices = @transform_12, window_bounds = array<i64: 32, 64>}, {pipeline_mode = #tpu.pipeline_mode<synchronous>, transform_indices = @transform_13, window_bounds = array<i64: 1, 64>}, {pipeline_mode = #tpu.pipeline_mode<synchronous>, transform_indices = @transform_14, window_bounds = array<i64: 64, 32>}, {pipeline_mode = #tpu.pipeline_mode<synchronous>, transform_indices = @transform_15, window_bounds = array<i64: 1, 32>}, {pipeline_mode = #tpu.pipeline_mode<synchronous>, transform_indices = @transform_16, window_bounds = array<i64: 1, 32>}, {pipeline_mode = #tpu.pipeline_mode<synchronous>, transform_indices = @transform_17, window_bounds = array<i64: 1, 32>}, {pipeline_mode = #tpu.pipeline_mode<synchronous>, transform_indices = @transform_18, window_bounds = array<i64: 24, 32>}]} {
    %c0 = arith.constant 0 : index
    %c0_0 = arith.constant 0 : index
    %0 = vector.load %arg1[%c0, %c0_0] : memref<24x8xf32, #tpu.memory_space<vmem>>, vector<24x8xf32>
    %c0_1 = arith.constant 0 : index
    %c0_2 = arith.constant 0 : index
    %1 = vector.load %arg6[%c0_1, %c0_2] : memref<8x32xf32, #tpu.memory_space<vmem>>, vector<8x32xf32>
    %cst = arith.constant dense<0.000000e+00> : vector<24x32xf32>
    %2 = tpu.matmul %0, %1, %cst {dimension_numbers = #tpu.dot_dimension_numbers<[1], [0], [0], [1], [0, 0, 1, 1], [], []>} : vector<24x8xf32>, vector<8x32xf32>, vector<24x32xf32> -> vector<24x32xf32>
    %c0_3 = arith.constant 0 : index
    %c0_4 = arith.constant 0 : index
    %3 = vector.load %arg7[%c0_3, %c0_4] : memref<1x32xf32, #tpu.memory_space<vmem>>, vector<1x32xf32>
    %4 = vector.broadcast %3 : vector<1x32xf32> to vector<24x32xf32>
    %5 = arith.addf %2, %4 : vector<24x32xf32>
    %c0_5 = arith.constant 0 : index
    %c0_6 = arith.constant 0 : index
    %6 = vector.load %arg8[%c0_5, %c0_6] : memref<8x32xf32, #tpu.memory_space<vmem>>, vector<8x32xf32>
    %cst_7 = arith.constant dense<0.000000e+00> : vector<24x32xf32>
    %7 = tpu.matmul %0, %6, %cst_7 {dimension_numbers = #tpu.dot_dimension_numbers<[1], [0], [0], [1], [0, 0, 1, 1], [], []>} : vector<24x8xf32>, vector<8x32xf32>, vector<24x32xf32> -> vector<24x32xf32>
    %c0_8 = arith.constant 0 : index
    %c0_9 = arith.constant 0 : index
    %8 = vector.load %arg9[%c0_8, %c0_9] : memref<1x32xf32, #tpu.memory_space<vmem>>, vector<1x32xf32>
    %9 = vector.broadcast %8 : vector<1x32xf32> to vector<24x32xf32>
    %10 = arith.addf %7, %9 : vector<24x32xf32>
    %c0_10 = arith.constant 0 : index
    %c0_11 = arith.constant 0 : index
    %11 = vector.load %arg5[%c0_10, %c0_11] : memref<48x2xf32, #tpu.memory_space<vmem>>, vector<48x2xf32>
    %c0_12 = arith.constant 0 : index
    %c0_13 = arith.constant 0 : index
    %12 = vector.load %arg10[%c0_12, %c0_13] : memref<2x32xf32, #tpu.memory_space<vmem>>, vector<2x32xf32>
    %cst_14 = arith.constant dense<0.000000e+00> : vector<48x32xf32>
    %13 = tpu.matmul %11, %12, %cst_14 {dimension_numbers = #tpu.dot_dimension_numbers<[1], [0], [0], [1], [0, 0, 1, 1], [], []>} : vector<48x2xf32>, vector<2x32xf32>, vector<48x32xf32> -> vector<48x32xf32>
    %c0_15 = arith.constant 0 : index
    %c0_16 = arith.constant 0 : index
    %14 = vector.load %arg11[%c0_15, %c0_16] : memref<1x32xf32, #tpu.memory_space<vmem>>, vector<1x32xf32>
    %15 = vector.broadcast %14 : vector<1x32xf32> to vector<48x32xf32>
    %16 = arith.addf %13, %15 : vector<48x32xf32>
    %17 = tpu.iota {dimensions = array<i32: 1>} : vector<48x24xi32>
    %c0_17 = arith.constant 0 : index
    %c0_18 = arith.constant 0 : index
    %18 = vector.load %arg2[%c0_17, %c0_18] : memref<48x1xi32, #tpu.memory_space<vmem>>, vector<48x1xi32>
    %19 = vector.broadcast %18 : vector<48x1xi32> to vector<48x24xi32>
    %20 = arith.cmpi eq, %19, %17 : vector<48x24xi32>
    %21 = arith.extui %20 : vector<48x24xi1> to vector<48x24xi32>
    %22 = arith.sitofp %21 : vector<48x24xi32> to vector<48x24xf32>
    %c0_19 = arith.constant 0 : index
    %c0_20 = arith.constant 0 : index
    %23 = vector.load %arg3[%c0_19, %c0_20] : memref<48x1xi32, #tpu.memory_space<vmem>>, vector<48x1xi32>
    %24 = vector.broadcast %23 : vector<48x1xi32> to vector<48x24xi32>
    %25 = arith.cmpi eq, %24, %17 : vector<48x24xi32>
    %26 = arith.extui %25 : vector<48x24xi1> to vector<48x24xi32>
    %27 = arith.sitofp %26 : vector<48x24xi32> to vector<48x24xf32>
    %28 = tpu.iota {dimensions = array<i32: 0>} : vector<24x48xi32>
    %c0_21 = arith.constant 0 : index
    %c0_22 = arith.constant 0 : index
    %29 = vector.load %arg4[%c0_21, %c0_22] : memref<1x48xi32, #tpu.memory_space<vmem>>, vector<1x48xi32>
    %30 = vector.broadcast %29 : vector<1x48xi32> to vector<24x48xi32>
    %31 = arith.cmpi eq, %30, %28 : vector<24x48xi32>
    %32 = arith.extui %31 : vector<24x48xi1> to vector<24x48xi32>
    %33 = arith.sitofp %32 : vector<24x48xi32> to vector<24x48xf32>
    %cst_23 = arith.constant dense<0.000000e+00> : vector<48x32xf32>
    %34 = tpu.matmul %22, %5, %cst_23 {dimension_numbers = #tpu.dot_dimension_numbers<[1], [0], [0], [1], [0, 0, 1, 1], [], []>} : vector<48x24xf32>, vector<24x32xf32>, vector<48x32xf32> -> vector<48x32xf32>
    %35 = arith.addf %34, %16 : vector<48x32xf32>
    %cst_24 = arith.constant 0.000000e+00 : f32
    %36 = vector.broadcast %cst_24 : f32 to vector<48x32xf32>
    %37 = arith.maximumf %35, %36 : vector<48x32xf32>
    %cst_25 = arith.constant 1.000000e-07 : f32
    %38 = vector.broadcast %cst_25 : f32 to vector<48x32xf32>
    %39 = arith.addf %37, %38 : vector<48x32xf32>
    %c0_26 = arith.constant 0 : index
    %c0_27 = arith.constant 0 : index
    %40 = vector.load %arg12[%c0_26, %c0_27] : memref<1x1xf32, #tpu.memory_space<vmem>>, vector<1x1xf32>
    %41 = vector.broadcast %40 : vector<1x1xf32> to vector<48x32xf32>
    %42 = arith.mulf %39, %41 : vector<48x32xf32>
    %cst_28 = arith.constant dense<0xFF800000> : vector<48xf32>
    %43 = vector.multi_reduction <maximumf>, %42, %cst_28 [1] : vector<48x32xf32> to vector<48xf32>
    %44 = vector.shape_cast %43 : vector<48xf32> to vector<48x1xf32>
    %cst_29 = arith.constant dense<0xFF800000> : vector<1xf32>
    %45 = vector.multi_reduction <maximumf>, %44, %cst_29 [0] : vector<48x1xf32> to vector<1xf32>
    %46 = vector.shape_cast %45 : vector<1xf32> to vector<1x1xf32>
    %47 = vector.broadcast %46 : vector<1x1xf32> to vector<48x32xf32>
    %48 = arith.subf %42, %47 : vector<48x32xf32>
    %49 = math.exp %48 : vector<48x32xf32>
    %cst_30 = arith.constant dense<0.000000e+00> : vector<24x32xf32>
    %50 = tpu.matmul %33, %49, %cst_30 {dimension_numbers = #tpu.dot_dimension_numbers<[1], [0], [0], [1], [0, 0, 1, 1], [], []>} : vector<24x48xf32>, vector<48x32xf32>, vector<24x32xf32> -> vector<24x32xf32>
    %cst_31 = arith.constant dense<0.000000e+00> : vector<48x32xf32>
    %51 = tpu.matmul %27, %50, %cst_31 {dimension_numbers = #tpu.dot_dimension_numbers<[1], [0], [0], [1], [0, 0, 1, 1], [], []>} : vector<48x24xf32>, vector<24x32xf32>, vector<48x32xf32> -> vector<48x32xf32>
    %cst_32 = arith.constant 1.000000e-16 : f32
    %52 = vector.broadcast %cst_32 : f32 to vector<48x32xf32>
    %53 = arith.addf %51, %52 : vector<48x32xf32>
    %54 = arith.divf %49, %53 : vector<48x32xf32>
    %55 = arith.mulf %54, %39 : vector<48x32xf32>
    %cst_33 = arith.constant dense<0.000000e+00> : vector<24x32xf32>
    %56 = tpu.matmul %33, %55, %cst_33 {dimension_numbers = #tpu.dot_dimension_numbers<[1], [0], [0], [1], [0, 0, 1, 1], [], []>} : vector<24x48xf32>, vector<48x32xf32>, vector<24x32xf32> -> vector<24x32xf32>
    %57 = arith.addf %56, %10 : vector<24x32xf32>
    %c0_34 = arith.constant 0 : index
    %c0_35 = arith.constant 0 : index
    %58 = vector.load %arg13[%c0_34, %c0_35] : memref<32x64xf32, #tpu.memory_space<vmem>>, vector<32x64xf32>
    %cst_36 = arith.constant dense<0.000000e+00> : vector<24x64xf32>
    %59 = tpu.matmul %57, %58, %cst_36 {dimension_numbers = #tpu.dot_dimension_numbers<[1], [0], [0], [1], [0, 0, 1, 1], [], []>} : vector<24x32xf32>, vector<32x64xf32>, vector<24x64xf32> -> vector<24x64xf32>
    %c0_37 = arith.constant 0 : index
    %c0_38 = arith.constant 0 : index
    %60 = vector.load %arg14[%c0_37, %c0_38] : memref<1x64xf32, #tpu.memory_space<vmem>>, vector<1x64xf32>
    %61 = vector.broadcast %60 : vector<1x64xf32> to vector<24x64xf32>
    %62 = arith.addf %59, %61 : vector<24x64xf32>
    %cst_39 = arith.constant 0.000000e+00 : f32
    %63 = vector.broadcast %cst_39 : f32 to vector<24x64xf32>
    %64 = arith.maximumf %62, %63 : vector<24x64xf32>
    %c0_40 = arith.constant 0 : index
    %c0_41 = arith.constant 0 : index
    %65 = vector.load %arg15[%c0_40, %c0_41] : memref<64x32xf32, #tpu.memory_space<vmem>>, vector<64x32xf32>
    %cst_42 = arith.constant dense<0.000000e+00> : vector<24x32xf32>
    %66 = tpu.matmul %64, %65, %cst_42 {dimension_numbers = #tpu.dot_dimension_numbers<[1], [0], [0], [1], [0, 0, 1, 1], [], []>} : vector<24x64xf32>, vector<64x32xf32>, vector<24x32xf32> -> vector<24x32xf32>
    %c0_43 = arith.constant 0 : index
    %c0_44 = arith.constant 0 : index
    %67 = vector.load %arg16[%c0_43, %c0_44] : memref<1x32xf32, #tpu.memory_space<vmem>>, vector<1x32xf32>
    %68 = vector.broadcast %67 : vector<1x32xf32> to vector<24x32xf32>
    %69 = arith.addf %66, %68 : vector<24x32xf32>
    %c0_45 = arith.constant 0 : index
    %c0_46 = arith.constant 0 : index
    %70 = vector.load %arg17[%c0_45, %c0_46] : memref<1x32xf32, #tpu.memory_space<vmem>>, vector<1x32xf32>
    %c0_47 = arith.constant 0 : index
    %c0_48 = arith.constant 0 : index
    %71 = vector.load %arg18[%c0_47, %c0_48] : memref<1x32xf32, #tpu.memory_space<vmem>>, vector<1x32xf32>
    %cst_49 = arith.constant dense<0.000000e+00> : vector<24xf32>
    %72 = vector.multi_reduction <add>, %69, %cst_49 [1] : vector<24x32xf32> to vector<24xf32>
    %73 = vector.shape_cast %72 : vector<24xf32> to vector<24x1xf32>
    %cst_50 = arith.constant 3.200000e+01 : f32
    %74 = vector.broadcast %cst_50 : f32 to vector<24x1xf32>
    %75 = arith.divf %73, %74 : vector<24x1xf32>
    %76 = vector.broadcast %75 : vector<24x1xf32> to vector<24x32xf32>
    %77 = arith.subf %69, %76 : vector<24x32xf32>
    %78 = arith.mulf %77, %77 : vector<24x32xf32>
    %cst_51 = arith.constant dense<0.000000e+00> : vector<24xf32>
    %79 = vector.multi_reduction <add>, %78, %cst_51 [1] : vector<24x32xf32> to vector<24xf32>
    %80 = vector.shape_cast %79 : vector<24xf32> to vector<24x1xf32>
    %cst_52 = arith.constant 3.200000e+01 : f32
    %81 = vector.broadcast %cst_52 : f32 to vector<24x1xf32>
    %82 = arith.divf %80, %81 : vector<24x1xf32>
    %cst_53 = arith.constant 9.99999974E-6 : f32
    %83 = vector.broadcast %cst_53 : f32 to vector<24x1xf32>
    %84 = arith.addf %82, %83 : vector<24x1xf32>
    %85 = math.rsqrt %84 : vector<24x1xf32>
    %86 = vector.broadcast %85 : vector<24x1xf32> to vector<24x32xf32>
    %87 = arith.mulf %77, %86 : vector<24x32xf32>
    %88 = vector.broadcast %70 : vector<1x32xf32> to vector<24x32xf32>
    %89 = arith.mulf %87, %88 : vector<24x32xf32>
    %90 = vector.broadcast %71 : vector<1x32xf32> to vector<24x32xf32>
    %91 = arith.addf %89, %90 : vector<24x32xf32>
    %cst_54 = arith.constant 0.000000e+00 : f32
    %92 = vector.broadcast %cst_54 : f32 to vector<24x32xf32>
    %93 = arith.cmpf ogt, %91, %92 : vector<24x32xf32>
    %cst_55 = arith.constant 0.000000e+00 : f32
    %94 = vector.broadcast %cst_55 : f32 to vector<24x32xf32>
    %95 = arith.minimumf %91, %94 : vector<24x32xf32>
    %96 = math.exp %95 : vector<24x32xf32>
    %cst_56 = arith.constant 1.000000e+00 : f32
    %97 = vector.broadcast %cst_56 : f32 to vector<24x32xf32>
    %98 = arith.subf %96, %97 : vector<24x32xf32>
    %99 = arith.select %93, %91, %98 : vector<24x32xi1>, vector<24x32xf32>
    %c0_57 = arith.constant 0 : index
    %c0_58 = arith.constant 0 : index
    %100 = vector.load %arg19[%c0_57, %c0_58] : memref<24x32xf32, #tpu.memory_space<vmem>>, vector<24x32xf32>
    tpu.vector_store %arg19[%c0_57, %c0_58], %99 {strides = array<i32>} : memref<24x32xf32, #tpu.memory_space<vmem>>, vector<24x32xf32>,
    return
  }
  func.func @transform_0(%arg0: i32) -> (i32, i32) {
    %c0_i32 = arith.constant 0 : i32
    %c0_i32_0 = arith.constant 0 : i32
    %c0_i32_1 = arith.constant 0 : i32
    return %c0_i32, %c0_i32_0 : i32, i32
  }
  func.func @transform_1(%arg0: i32) -> (i32, i32) {
    %c0_i32 = arith.constant 0 : i32
    %c0_i32_0 = arith.constant 0 : i32
    %c0_i32_1 = arith.constant 0 : i32
    return %c0_i32, %c0_i32_0 : i32, i32
  }
  func.func @transform_2(%arg0: i32) -> (i32, i32) {
    %c0_i32 = arith.constant 0 : i32
    %c0_i32_0 = arith.constant 0 : i32
    %c0_i32_1 = arith.constant 0 : i32
    return %c0_i32, %c0_i32_0 : i32, i32
  }
  func.func @transform_3(%arg0: i32) -> (i32, i32) {
    %c0_i32 = arith.constant 0 : i32
    %c0_i32_0 = arith.constant 0 : i32
    %c0_i32_1 = arith.constant 0 : i32
    return %c0_i32, %c0_i32_0 : i32, i32
  }
  func.func @transform_4(%arg0: i32) -> (i32, i32) {
    %c0_i32 = arith.constant 0 : i32
    %c0_i32_0 = arith.constant 0 : i32
    %c0_i32_1 = arith.constant 0 : i32
    return %c0_i32, %c0_i32_0 : i32, i32
  }
  func.func @transform_5(%arg0: i32) -> (i32, i32) {
    %c0_i32 = arith.constant 0 : i32
    %c0_i32_0 = arith.constant 0 : i32
    %c0_i32_1 = arith.constant 0 : i32
    return %c0_i32, %c0_i32_0 : i32, i32
  }
  func.func @transform_6(%arg0: i32) -> (i32, i32) {
    %c0_i32 = arith.constant 0 : i32
    %c0_i32_0 = arith.constant 0 : i32
    %c0_i32_1 = arith.constant 0 : i32
    return %c0_i32, %c0_i32_0 : i32, i32
  }
  func.func @transform_7(%arg0: i32) -> (i32, i32) {
    %c0_i32 = arith.constant 0 : i32
    %c0_i32_0 = arith.constant 0 : i32
    %c0_i32_1 = arith.constant 0 : i32
    return %c0_i32, %c0_i32_0 : i32, i32
  }
  func.func @transform_8(%arg0: i32) -> (i32, i32) {
    %c0_i32 = arith.constant 0 : i32
    %c0_i32_0 = arith.constant 0 : i32
    %c0_i32_1 = arith.constant 0 : i32
    return %c0_i32, %c0_i32_0 : i32, i32
  }
  func.func @transform_9(%arg0: i32) -> (i32, i32) {
    %c0_i32 = arith.constant 0 : i32
    %c0_i32_0 = arith.constant 0 : i32
    %c0_i32_1 = arith.constant 0 : i32
    return %c0_i32, %c0_i32_0 : i32, i32
  }
  func.func @transform_10(%arg0: i32) -> (i32, i32) {
    %c0_i32 = arith.constant 0 : i32
    %c0_i32_0 = arith.constant 0 : i32
    %c0_i32_1 = arith.constant 0 : i32
    return %c0_i32, %c0_i32_0 : i32, i32
  }
  func.func @transform_11(%arg0: i32) -> (i32, i32) {
    %c0_i32 = arith.constant 0 : i32
    %c0_i32_0 = arith.constant 0 : i32
    %c0_i32_1 = arith.constant 0 : i32
    return %c0_i32, %c0_i32_0 : i32, i32
  }
  func.func @transform_12(%arg0: i32) -> (i32, i32) {
    %c0_i32 = arith.constant 0 : i32
    %c0_i32_0 = arith.constant 0 : i32
    %c0_i32_1 = arith.constant 0 : i32
    return %c0_i32, %c0_i32_0 : i32, i32
  }
  func.func @transform_13(%arg0: i32) -> (i32, i32) {
    %c0_i32 = arith.constant 0 : i32
    %c0_i32_0 = arith.constant 0 : i32
    %c0_i32_1 = arith.constant 0 : i32
    return %c0_i32, %c0_i32_0 : i32, i32
  }
  func.func @transform_14(%arg0: i32) -> (i32, i32) {
    %c0_i32 = arith.constant 0 : i32
    %c0_i32_0 = arith.constant 0 : i32
    %c0_i32_1 = arith.constant 0 : i32
    return %c0_i32, %c0_i32_0 : i32, i32
  }
  func.func @transform_15(%arg0: i32) -> (i32, i32) {
    %c0_i32 = arith.constant 0 : i32
    %c0_i32_0 = arith.constant 0 : i32
    %c0_i32_1 = arith.constant 0 : i32
    return %c0_i32, %c0_i32_0 : i32, i32
  }
  func.func @transform_16(%arg0: i32) -> (i32, i32) {
    %c0_i32 = arith.constant 0 : i32
    %c0_i32_0 = arith.constant 0 : i32
    %c0_i32_1 = arith.constant 0 : i32
    return %c0_i32, %c0_i32_0 : i32, i32
  }
  func.func @transform_17(%arg0: i32) -> (i32, i32) {
    %c0_i32 = arith.constant 0 : i32
    %c0_i32_0 = arith.constant 0 : i32
    %c0_i32_1 = arith.constant 0 : i32
    return %c0_i32, %c0_i32_0 : i32, i32
  }
  func.func @transform_18(%arg0: i32) -> (i32, i32) {
    %c0_i32 = arith.constant 0 : i32
    %c0_i32_0 = arith.constant 0 : i32
    %c0_i32_1 = arith.constant 0 : i32
    return %c0_i32, %c0_i32_0 : i32, i32
  }
}

</mosaic_0001>

<bundles_post_ra>
// kernel: tpu_custom_call.1
= control target key start
LH: loop header
LB: loop body
LE: loop exit
PB: predicated region body
PF: predicated region fallthrough
CT: control target
= control target key end

     0   :  { %s2166_s0 = inlined_call_operand.vmem [shape: f32[24,8], index: 0, kind: input, shape index: {}]   ;;  %s2167_s1 = inlined_call_operand.vmem [shape: s32[48,1], index: 1, kind: input, shape index: {}]   ;;  %s2168_s2 = inlined_call_operand.vmem [shape: s32[48,1], index: 2, kind: input, shape index: {}]   ;;  %s2169_s3 = inlined_call_operand.vmem [shape: s32[1,48], index: 3, kind: input, shape index: {}]   ;;  %s2170_s4 = inlined_call_operand.vmem [shape: f32[48,2], index: 4, kind: input, shape index: {}]   ;;  %s2171_s5 = inlined_call_operand.vmem [shape: f32[8,32], index: 5, kind: input, shape index: {}]   ;;  %s2172_s6 = inlined_call_operand.vmem [shape: f32[1,32], index: 6, kind: input, shape index: {}]   ;;  %s2173_s7 = inlined_call_operand.vmem [shape: f32[8,32], index: 7, kind: input, shape index: {}]   ;;  %s2174_s8 = inlined_call_operand.vmem [shape: f32[1,32], index: 8, kind: input, shape index: {}]   ;;  %s2175_s9 = inlined_call_operand.vmem [shape: f32[2,32], index: 9, kind: input, shape index: {}]   ;;  %s2176_s10 = inlined_call_operand.vmem [shape: f32[1,32], index: 10, kind: input, shape index: {}]   ;;  %s2177_s11 = inlined_call_operand.<no memory space> [shape: f32[1,1], index: 11, kind: input, shape index: {}]   ;;  %s2178_s12 = inlined_call_operand.vmem [shape: f32[32,64], index: 12, kind: input, shape index: {}]   ;;  %s2179_s13 = inlined_call_operand.vmem [shape: f32[1,64], index: 13, kind: input, shape index: {}]   ;;  %s2180_s14 = inlined_call_operand.vmem [shape: f32[64,32], index: 14, kind: input, shape index: {}]   ;;  %s2181_s15 = inlined_call_operand.vmem [shape: f32[1,32], index: 15, kind: input, shape index: {}]   ;;  %s2182_s16 = inlined_call_operand.vmem [shape: f32[1,32], index: 16, kind: input, shape index: {}]   ;;  %s2183_s17 = inlined_call_operand.vmem [shape: f32[1,32], index: 17, kind: input, shape index: {}]   ;;  %s2184_s18 = inlined_call_operand.hbm [shape: f32[24,32], index: 18, kind: output, shape index: {}]  }
   0x1   :  { %2188 = sst [smem:[#allocation6_spill]] %s2166_s0  ;;  %v23_v0 = vstv %s2177_s11 }
   0x2   :  { %2189 = sst [smem:[#allocation7_spill]] %s2167_s1  ;;  %24 = vst [vmem:[#allocation2] sm:$0x1] %v23_v0 }
   0x3   :  { %2190 = sst [smem:[#allocation8_spill]] %s2168_s2 }
   0x4   :  { %v65_v1 = vld [vmem:[%s2171_s5] sm:$0xff]  ;;  %v1699_v2 = vmov 0.0   ;;  %s2191_s1 = sld [smem:[#allocation6_spill]]  ;;  %vm73_vm0 = vcmask 64512   ;;  %vm1700_vm1 = vmmov 0   ;;  %s2192_s22 = sld [smem:[#allocation7_spill]] }
   0x5   :  { %1416 = vmatprep.subr.mxu0 %v1699_v2  ;;  %1607 = vmatprep.subr.mxu1 %v1699_v2 }
   0x6   :  { %1417 = vmatpush3.msra.mxu0 %v65_v1  ;;  %1608 = vmatpush3.msra.mxu1 %v65_v1 }
   0x7   :  { %1418 = vmatprep.mubr.msk.f32.mxu0 %vm1700_vm1, %v1699_v2  ;;  %1421 = vmatprep.mubr.msk.f32.mxu1 %vm1700_vm1, %v1699_v2 }
   0xa   :  { %v1812_v3 = vld [vmem:[%s2191_s1] sm:$0xff]  ;;  %v1817_v4 = vld [vmem:[%s2191_s1 + $0x8] sm:$0xff] }
   0xb   :  { %v385_v5 = vld [vmem:[%s2192_s22] sm:$0xff] }
   0xc   :  { %25 = vsyncpa [#allocation4], 0  ;;  %1419 = vmatmul.mubr.msk.f32.vlgmr.msra.gmra.mrb[0].mxu0 %vm73_vm0, %v1812_v3  ;;  %1422 = vmatmul.mubr.msk.f32.vlgmr.msra.gmra.mrb[0].mxu1 %vm73_vm0, %v1817_v4  ;;  %v387_v6 = vld [vmem:[%s2192_s22 + $0x10] sm:$0xff]  ;;  %v1701_v8 = vmov 0   ;;  %v386_v9 = vld [vmem:[%s2192_s22 + $0x8] sm:$0xff]  ;;  %vm284_vm2 = vcmask 1041408   ;;  %v383_v21 = vlaneseq }
   0xd   :  { %1424 = vmatprep.mubr.msk.f32.mxu1 %vm1700_vm1, %v1699_v2  ;;  %v1838_v7 = vld [vmem:[%s2191_s1 + $0x10] sm:$0xff]  ;;  %1637 = vset.pattern.permute.xlu0 %v1701_v8  ;;  %v388_v10 = vld [vmem:[%s2192_s22 + $0x18] sm:$0xff]  ;;  %v389_v11 = vld [vmem:[%s2192_s22 + $0x20] sm:$0xff]  ;;  %vm265_vm3 = vcmask 15360   ;;  %vm487_vm4 = vcmask 195584   ;;  %vm629_vm11 = vcmask 261120  }
   0xe   :  { %392 = vperm.xlu0 %1637, %v385_v5   ;;  %1638 = vset.pattern.permute.xlu1 %v1701_v8  ;;  %v257_v12 = vld [vmem:[%s2175_s9] sm:$0x3]  ;;  %v252_v14 = vld [vmem:[%s2170_s4 + $0x8] sm:$0xff]  ;;  %v253_v17 = vld [vmem:[%s2170_s4 + $0x10] sm:$0xff]  ;;  %v1885_v22 = vand.u32 127, %v383_v21  ;;  %s2193_s1 = sld [smem:[#allocation8_spill]] }
   0xf   :  { %398 = vperm.xlu1 %1638, %v387_v6   ;;  %1427 = vmatprep.subr.mxu1 %v1699_v2  ;;  %v251_v13 = vld [vmem:[%s2170_s4] sm:$0xff]  ;;  %v390_v15 = vld [vmem:[%s2192_s22 + $0x28] sm:$0xff]  ;;  %v254_v18 = vld [vmem:[%s2170_s4 + $0x18] sm:$0xff]  ;;  %vm677_vm13 = vcmask 392192  }
  0x10   :  { %1425 = vmatmul.mubr.msk.f32.gmra.mrb[2].mxu1 %vm73_vm0, %v1838_v7  ;;  %1438 = vmatprep.subr.msk.mxu0 %vm284_vm2, %v257_v12  ;;  %v1321_v16 = vld [vmem:[#allocation2] ss:$0 sm:$0xff]  ;;  %v256_v20 = vld [vmem:[%s2170_s4 + $0x28] sm:$0xff] }
  0x11   :  { %1429 = vmatprep.mubr.msk.f32.mxu1 %vm1700_vm1, %v1699_v2  ;;  %1440 = vmatprep.mubr.msk.f32.mxu0 %vm265_vm3, %v251_v13  ;;  %v255_v19 = vld [vmem:[%s2170_s4 + $0x20] sm:$0xff] }
  0x12   :  { %395 = vperm.xlu0 %1637, %v386_v9   ;;  %1439 = vmatpush3.msk.msra.mxu0 %vm284_vm2, %v257_v12  ;;  %v1283_v25 = vld [vmem:[%s2172_s6] ss:$0 sm:$0xff] }
  0x13   :  { %401 = vperm.xlu1 %1638, %v388_v10   ;;  %1441 = vmatmul.mubr.msk.f32.vlgmr.msra.gmra.mrb[2].mxu0 %vm265_vm3, %v252_v14  ;;  %v1291_v46 = vld [vmem:[%s2176_s10] ss:$0 sm:$0xff] }
  0x14   :  { %1443 = vmatprep.mubr.msk.f32.mxu0 %vm265_vm3, %v253_v17 }
  0x16   :  { %404 = vperm.xlu0 %1637, %v389_v11  }
  0x17   :  { %407 = vperm.xlu1 %1638, %v390_v15   ;;  %1444 = vmatmul.mubr.msk.f32.gmra.mrb[4].mxu0 %vm265_vm3, %v254_v18 }
  0x18   :  { %1446 = vmatprep.mubr.msk.f32.mxu0 %vm265_vm3, %v255_v19 }
  0x1a   :  { %620 = vperm.xlu0 %1637, %v1321_v16  }
  0x1b   :  { %1447 = vmatmul.mubr.msk.f32.gmra.mrb[6].mxu0 %vm265_vm3, %v256_v20 }
  0x8d   :  { %v393_v23 = vpop.permute.xlu0 %392 }
  0x8e   :  { %vm409_vm5 = vcmp.eq.s32.totalorder %v393_v23, %v1885_v22  ;;  %v399_v26 = vpop.permute.xlu1 %398 }
  0x8f   :  { %v1299_v24 = vsel %vm409_vm5, 1.0, %v1699_v2  ;;  %vm411_vm6 = vcmp.eq.s32.totalorder %v399_v26, %v1885_v22  ;;  %v428_v26 = vld [vmem:[%s2193_s1 + $0x8] sm:$0xff] }
  0x90   :  { %1455 = vmatprep.mubr.msk.f32.mxu0 %vm487_vm4, %v1299_v24  ;;  %v1301_v39 = vsel %vm411_vm6, 1.0, %v1699_v2 }
  0x91   :  { %v396_v35 = vpop.permute.xlu0 %395 }
  0x92   :  { %v402_v38 = vpop.permute.xlu1 %401  ;;  %vm410_vm7 = vcmp.eq.s32.totalorder %v396_v35, %v1885_v22 }
  0x93   :  { %v1300_v40 = vsel %vm410_vm7, 1.0, %v1699_v2  ;;  %vm412_vm8 = vcmp.eq.s32.totalorder %v402_v38, %v1885_v22 }
  0x94   :  { %v1302_v43 = vsel %vm412_vm8, 1.0, %v1699_v2 }
  0x95   :  { %v405_v41 = vpop.permute.xlu0 %404 }
  0x96   :  { %vm413_vm9 = vcmp.eq.s32.totalorder %v405_v41, %v1885_v22  ;;  %v408_v42 = vpop.permute.xlu1 %407 }
  0x97   :  { %v1303_v44 = vsel %vm413_vm9, 1.0, %v1699_v2  ;;  %vm414_vm10 = vcmp.eq.s32.totalorder %v408_v42, %v1885_v22 }
  0x98   :  { %v1304_v45 = vsel %vm414_vm10, 1.0, %v1699_v2 }
  0x99   :  { %v621_v57 = vpop.permute.xlu0 %620 }
  0xdf   :  { %v149_v27 = vpop.f32.mrb[0].mxu0  ;;  %v154_v28 = vpop.f32.mrb[0].mxu1 }
  0xe0   :  { %v150_v29 = vadd.f32 %v1283_v25, %v149_v27  ;;  %v155_v30 = vadd.f32 %v1283_v25, %v154_v28  ;;  %v1420_v31 = vpop.f32.mrb[1].mxu0  ;;  %v1423_v32 = vpop.f32.mrb[1].mxu1  ;;  %v429_v27 = vld [vmem:[%s2193_s1 + $0x10] sm:$0xff]  ;;  %v427_v28 = vld [vmem:[%s2193_s1] sm:$0xff] }
  0xe1   :  { %v432_v31 = vld [vmem:[%s2193_s1 + $0x28] sm:$0xff]  ;;  %v163_v32 = vld [vmem:[%s2173_s7] sm:$0xff] }
  0xe2   :  { %v1563_v33 = vpack.c.bf16 %v155_v30, %v150_v29  ;;  %v431_v29 = vld [vmem:[%s2193_s1 + $0x20] sm:$0xff]  ;;  %v430_v30 = vld [vmem:[%s2193_s1 + $0x18] sm:$0xff]  ;;  %1428 = vmatpush3.msra.mxu1 %v163_v32 }
  0xe3   :  { %v159_v34 = vpop.f32.mrb[2].mxu1  ;;  %1430 = vmatmul.mubr.msk.f32.vlgmr.msra.gmra.mrb[4].mxu1 %vm73_vm0, %v1812_v3 }
  0xe4   :  { %v160_v36 = vadd.f32 %v1283_v25, %v159_v34  ;;  %1564 = vmatprep.subr.bf16.mxu0 %v1563_v33  ;;  %v1426_v37 = vpop.f32.mrb[3].mxu1  ;;  %1432 = vmatprep.mubr.msk.f32.mxu1 %vm1700_vm1, %v1699_v2 }
  0xe5   :  { %1566 = vmatpush3.bf16.msra.mxu0 %v1563_v33  ;;  %v1702_v33 = vmov 0.0|0.0  }
  0xe6   :  { %1453 = vmatprep.subr.mxu0 %v160_v36  ;;  %1567 = vmatprep.subr.bf16.mxu1 %v1702_v33 }
  0xe7   :  { %1433 = vmatmul.mubr.msk.f32.gmra.mrb[6].mxu1 %vm73_vm0, %v1817_v4 }
  0xe8   :  { %1435 = vmatprep.mubr.msk.f32.mxu1 %vm1700_vm1, %v1699_v2 }
  0xe9   :  { %1454 = vmatpush3.msra.mxu0 %v160_v36 }
  0xea   :  { %1456 = vmatmul.mubr.msk.f32.vlgmr.msra.gmra.mrb[2].mxu0 %vm487_vm4, %v1300_v40  ;;  %1589 = vmatprep.subr.bf16.mxu0 %v1702_v33 }
  0xeb   :  { %1458 = vmatprep.mubr.msk.f32.mxu0 %vm487_vm4, %v1301_v39  ;;  %1436 = vmatmul.mubr.msk.f32.gmra.mrb[8].mxu1 %vm73_vm0, %v1838_v7 }
  0xec   :  { %1476 = vmatprep.mubr.msk.f32.mxu1 %vm1700_vm1, %v1699_v2 }
  0xee   :  { %1459 = vmatmul.mubr.msk.f32.gmra.mrb[4].mxu0 %vm487_vm4, %v1302_v43 }
  0xef   :  { %1461 = vmatprep.mubr.msk.f32.mxu0 %vm487_vm4, %v1303_v44 }
  0xf2   :  { %1462 = vmatmul.mubr.msk.f32.gmra.mrb[6].mxu0 %vm487_vm4, %v1304_v45 }
  0xf3   :  { %1529 = vmatprep.mubr.msk.f32.mxu0 %vm1700_vm1, %v1699_v2 }
 0x1bd   :  { %v1457_v47 = vpop.f32.mrb[2].mxu0 }
 0x1be   :  { %v1612_v48 = vadd.f32 %v1457_v47, %v1291_v46  ;;  %v572_v49 = vpop.f32.mrb[3].mxu0 }
 0x1bf   :  { %v1613_v50 = vadd.f32 %v1291_v46, %v572_v49 }
 0x1c0   :  { %v602_v51 = vmax.f32 %v1612_v48, 0.0 }
 0x1c1   :  { %v601_v52 = vmax.f32 %v1613_v50, 0.0  ;;  %v1460_v53 = vpop.f32.mrb[4].mxu0 }
 0x1c2   :  { %v1913_v54 = vadd.f32 1e-07, %v602_v51  ;;  %v1614_v55 = vadd.f32 %v1460_v53, %v1291_v46  ;;  %v582_v56 = vpop.f32.mrb[5].mxu0 }
 0x1c3   :  { %v1915_v58 = vadd.f32 1e-07, %v601_v52  ;;  %v1615_v59 = vadd.f32 %v1291_v46, %v582_v56 }
 0x1c4   :  { %v1918_v60 = vmul.f32 %v621_v57, %v1913_v54  ;;  %v604_v63 = vmax.f32 %v1614_v55, 0.0 }
 0x1c5   :  { %v1463_v61 = vpop.f32.mrb[6].mxu0  ;;  %v1921_v62 = vmul.f32 %v621_v57, %v1915_v58  ;;  %v603_v6 = vmax.f32 %v1615_v59, 0.0 }
 0x1c6   :  { %v1616_v0 = vadd.f32 %v1463_v61, %v1291_v46  ;;  %v592_v1 = vpop.f32.mrb[7].mxu0  ;;  %v633_v5 = vsel %vm629_vm11, %v1918_v60, -inf  ;;  %v1927_v12 = vadd.f32 1e-07, %v604_v63 }
 0x1c7   :  { %v1617_v8 = vadd.f32 %v1291_v46, %v592_v1  ;;  %634 = vmax.xlane.f32.xlu0 %v633_v5  ;;  %v630_v9 = vsel %vm629_vm11, %v1921_v62, -inf  ;;  %v1931_v14 = vadd.f32 1e-07, %v603_v6  ;;  %v470_v6 = vshrl.u32 %v383_v21, 7 }
 0x1c8   :  { %v606_v10 = vmax.f32 %v1616_v0, 0.0  ;;  %631 = vmax.xlane.f32.xlu1 %v630_v9  ;;  %v626_v19 = vmul.f32 %v621_v57, %v1927_v12 }
 0x1c9   :  { %v605_v11 = vmax.f32 %v1617_v8, 0.0  ;;  %v625_v23 = vmul.f32 %v621_v57, %v1931_v14 }
 0x1ca   :  { %v1929_v13 = vadd.f32 1e-07, %v606_v10  ;;  %v639_v24 = vsel %vm629_vm11, %v626_v19, -inf  ;;  %v1311_v10 = vld [vmem:[%s2169_s3] ss:$0 sm:$0xff] }
 0x1cb   :  { %v1933_v15 = vadd.f32 1e-07, %v605_v11  ;;  %v636_v25 = vsel %vm629_vm11, %v625_v23, -inf  ;;  %vm478_vm12 = vcmp.eq.s32.totalorder %v1311_v10, %v470_v6 }
 0x1cc   :  { %v1936_v16 = vmul.f32 %v621_v57, %v1929_v13  ;;  %v2013_v21 = vsel %vm478_vm12, 1.0, %v1699_v2 }
 0x1cd   :  { %v1939_v17 = vmul.f32 %v621_v57, %v1933_v15 }
 0x1ce   :  { %v645_v18 = vsel %vm629_vm11, %v1936_v16, -inf }
 0x1cf   :  { %646 = vmax.xlane.f32.xlu1 %v645_v18  ;;  %v642_v20 = vsel %vm629_vm11, %v1939_v17, -inf  ;;  %v472_v18 = vadd.s32 16, %v470_v6 }
 0x1d0   :  { %643 = vmax.xlane.f32.xlu0 %v642_v20 }
 0x1d1   :  { %vm480_vm15 = vcmp.eq.s32.totalorder %v1311_v10, %v472_v18 }
 0x1d3   :  { %640 = vmax.xlane.f32.xlu1 %v639_v24 }
 0x1d4   :  { %637 = vmax.xlane.f32.xlu0 %v636_v25 }
 0x1e4   :  { %437 = vperm.xlu1 %1638, %v428_v26  }
 0x1e8   :  { %440 = vperm.xlu1 %1638, %v429_v27  }
 0x1ea   :  { %434 = vperm.xlu0 %1637, %v427_v28  }
 0x1ec   :  { %446 = vperm.xlu1 %1638, %v431_v29  }
 0x1ee   :  { %443 = vperm.xlu0 %1637, %v430_v30  }
 0x1f2   :  { %449 = vperm.xlu0 %1637, %v432_v31  }
 0x254   :  { %v635_v35 = vpop.xlane.xlu0 %634 }
 0x255   :  { %v632_v34 = vpop.xlane.xlu1 %631 }
 0x25c   :  { %v647_v3 = vpop.xlane.xlu1 %646 }
 0x25d   :  { %v644_v36 = vpop.xlane.xlu0 %643  ;;  %v649_v37 = vmax.f32 %v635_v35, %v647_v3 }
 0x25e   :  { %v648_v38 = vmax.f32 %v632_v34, %v644_v36 }
 0x260   :  { %v641_v39 = vpop.xlane.xlu1 %640  ;;  %v650_v41 = vmax.f32 %v648_v38, %v649_v37 }
 0x261   :  { %v638_v40 = vpop.xlane.xlu0 %637 }
 0x262   :  { %v651_v42 = vmax.f32 %v638_v40, %v641_v39 }
 0x264   :  { %v652_v4 = vmax.f32 %v650_v41, %v651_v42  ;;  %v438_v25 = vpop.permute.xlu1 %437  ;;  %v978_v42 = vld [vmem:[%s2178_s12] sm:$0xff] }
 0x265   :  { %vm452_vm2 = vcmp.eq.s32.totalorder %v438_v25, %v1885_v22 }
 0x266   :  { %v653_v43 = vrot.slane %v652_v4, 4  ;;  %v1306_v36 = vsel %vm452_vm2, 1.0, %v1699_v2 }
 0x268   :  { %v654_v44 = vmax.f32 %v652_v4, %v653_v43  ;;  %v441_v29 = vpop.permute.xlu1 %440  ;;  %v979_v4 = vld [vmem:[%s2178_s12 + $0x8] sm:$0xff] }
 0x269   :  { %v435_v20 = vpop.permute.xlu0 %434  ;;  %vm453_vm3 = vcmp.eq.s32.totalorder %v441_v29, %v1885_v22 }
 0x26a   :  { %v655_v45 = vrot.slane %v654_v44, 2  ;;  %vm451_vm0 = vcmp.eq.s32.totalorder %v435_v20, %v1885_v22  ;;  %v1307_v37 = vsel %vm453_vm3, 1.0, %v1699_v2 }
 0x26b   :  { %v1305_v24 = vsel %vm451_vm0, 1.0, %v1699_v2 }
 0x26c   :  { %v656_v46 = vmax.f32 %v654_v44, %v655_v45  ;;  %v447_v3 = vpop.permute.xlu1 %446 }
 0x26d   :  { %v444_v32 = vpop.permute.xlu0 %443  ;;  %vm455_vm6 = vcmp.eq.s32.totalorder %v447_v3, %v1885_v22 }
 0x26e   :  { %v657_v47 = vrot.slane %v656_v46, 1  ;;  %vm454_vm5 = vcmp.eq.s32.totalorder %v444_v32, %v1885_v22  ;;  %v1309_v40 = vsel %vm455_vm6, 1.0, %v1699_v2  ;;  %v1085_v32 = vld [vmem:[%s2180_s14 + $0x20] sm:$0xff] }
 0x26f   :  { %v1308_v39 = vsel %vm454_vm5, 1.0, %v1699_v2 }
 0x270   :  { %v658_v7 = vmax.f32 %v656_v46, %v657_v47 }
 0x271   :  { %v450_v38 = vpop.permute.xlu0 %449 }
 0x272   :  { %v659_v48 = vsub.f32 %v1921_v62, %v658_v7  ;;  %v660_v49 = vsub.f32 %v1918_v60, %v658_v7  ;;  %v661_v50 = vsub.f32 %v625_v23, %v658_v7  ;;  %v662_v51 = vsub.f32 %v626_v19, %v658_v7 }
 0x273   :  { %v663_v56 = vsub.f32 %v1939_v17, %v658_v7  ;;  %v664_v59 = vsub.f32 %v1936_v16, %v658_v7  ;;  %v471_v16 = vadd.s32 8, %v470_v6  ;;  %v2028_v23 = vsel %vm480_vm15, 1.0, %v1699_v2 }
 0x274   :  { %v665_v52 = vmul.f32 1.442695, %v659_v48  ;;  %v667_v53 = vmul.f32 1.442695, %v660_v49  ;;  %v669_v55 = vmul.f32 1.442695, %v661_v50  ;;  %vm456_vm7 = vcmp.eq.s32.totalorder %v450_v38, %v1885_v22 }
 0x275   :  { %v671_v57 = vmul.f32 1.442695, %v662_v51  ;;  %v673_v61 = vmul.f32 1.442695, %v663_v56  ;;  %v675_v63 = vmul.f32 1.442695, %v664_v59  ;;  %vm479_vm14 = vcmp.eq.s32.totalorder %v1311_v10, %v471_v16 }
 0x276   :  { %1639 = vpow2.f32 %v665_v52  ;;  %v2020_v19 = vsel %vm479_vm14, 1.0, %v1699_v2  ;;  %v1310_v41 = vsel %vm456_vm7, 1.0, %v1699_v2  ;;  %v1590_v22 = vpack.c.bf16 %v979_v4, %v978_v42  ;;  %v1087_v38 = vld [vmem:[%s2180_s14 + $0x30] sm:$0xff] }
 0x277   :  { %1641 = vpow2.f32 %v667_v53 }
 0x278   :  { %1643 = vpow2.f32 %v669_v55  ;;  %1591 = vmatpush3.bf16.msra.mxu0 %v1590_v22 }
 0x279   :  { %1645 = vpow2.f32 %v671_v57  ;;  %1592 = vmatprep.subr.bf16.mxu0 %v1702_v33 }
 0x27a   :  { %1647 = vpow2.f32 %v673_v61 }
 0x27b   :  { %1649 = vpow2.f32 %v675_v63 }
 0x280   :  { %v1988_v62 = vpop.eup %1639 }
 0x281   :  { %v1990_v60 = vpop.eup %1641 }
 0x282   :  { %v1992_v0 = vpop.eup %1643  ;;  %v1568_v1 = vpack.c.bf16 %v1990_v60, %v1988_v62 }
 0x283   :  { %v1996_v5 = vpop.eup %1645 }
 0x284   :  { %1569 = vmatpush3.bf16.msra.mxu1 %v1568_v1  ;;  %v2000_v8 = vpop.eup %1647  ;;  %v1571_v9 = vpack.c.bf16 %v1996_v5, %v1992_v0 }
 0x285   :  { %1570 = vmatprep.subr.bf16.mxu1 %v1702_v33  ;;  %v2007_v11 = vpop.eup %1649 }
 0x286   :  { %v1574_v17 = vpack.c.bf16 %v2007_v11, %v2000_v8 }
 0x288   :  { %1572 = vmatpush3.bf16.msra.mxu1 %v1571_v9 }
 0x289   :  { %1573 = vmatprep.subr.bf16.mxu1 %v1702_v33 }
 0x28c   :  { %1575 = vmatpush3.bf16.msra.mxu1 %v1574_v17 }
 0x28f   :  { %1477 = vmatmul.mubr.msk.f32.vlgmr.msra.gmra.mrb[10].mxu1 %vm677_vm13, %v2013_v21 }
 0x290   :  { %1479 = vmatprep.mubr.msk.f32.mxu1 %vm1700_vm1, %v1699_v2 }
 0x293   :  { %1480 = vmatmul.mubr.msk.f32.gmra.mrb[12].mxu1 %vm677_vm13, %v2020_v19 }
 0x294   :  { %1482 = vmatprep.mubr.msk.f32.mxu1 %vm1700_vm1, %v1699_v2 }
 0x297   :  { %1483 = vmatmul.mubr.msk.f32.gmra.mrb[14].mxu1 %vm677_vm13, %v2028_v23 }
 0x298   :  { %1491 = vmatprep.mubr.msk.f32.mxu1 %vm487_vm4, %v1305_v24 }
 0x362   :  { %v753_v26 = vpop.f32.mrb[10].mxu1 }
 0x363   :  { %v1478_v27 = vpop.f32.mrb[11].mxu1 }
 0x364   :  { %v1084_v27 = vld [vmem:[%s2180_s14 + $0x18] sm:$0xff] }
 0x366   :  { %v758_v28 = vpop.f32.mrb[12].mxu1 }
 0x367   :  { %v1576_v30 = vpack.c.bf16 %v758_v28, %v753_v26  ;;  %v1481_v31 = vpop.f32.mrb[13].mxu1  ;;  %v1083_v26 = vld [vmem:[%s2180_s14 + $0x10] sm:$0xff] }
 0x368   :  { %v1599_v29 = vpack.c.bf16 %v1084_v27, %v1083_v26 }
 0x369   :  { %1577 = vmatprep.subr.bf16.mxu1 %v1576_v30 }
 0x36a   :  { %1579 = vmatpush3.bf16.msra.mxu1 %v1576_v30  ;;  %v763_v34 = vpop.f32.mrb[14].mxu1 }
 0x36b   :  { %1489 = vmatprep.subr.mxu1 %v763_v34  ;;  %v1484_v35 = vpop.f32.mrb[15].mxu1 }
 0x36e   :  { %1490 = vmatpush3.msra.mxu1 %v763_v34  ;;  %v1086_v34 = vld [vmem:[%s2180_s14 + $0x28] sm:$0xff] }
 0x36f   :  { %1492 = vmatmul.mubr.msk.f32.vlgmr.msra.gmra.mrb[16].mxu1 %vm487_vm4, %v1306_v36  ;;  %1580 = vmatprep.subr.bf16.mxu1 %v1702_v33  ;;  %v1602_v3 = vpack.c.bf16 %v1086_v34, %v1085_v32 }
 0x370   :  { %1494 = vmatprep.mubr.msk.f32.mxu1 %vm487_vm4, %v1307_v37 }
 0x373   :  { %1495 = vmatmul.mubr.msk.f32.gmra.mrb[18].mxu1 %vm487_vm4, %v1308_v39  ;;  %v1088_v39 = vld [vmem:[%s2180_s14 + $0x38] sm:$0xff] }
 0x374   :  { %1497 = vmatprep.mubr.msk.f32.mxu1 %vm487_vm4, %v1309_v40  ;;  %v1605_v40 = vpack.c.bf16 %v1088_v39, %v1087_v38 }
 0x377   :  { %1498 = vmatmul.mubr.msk.f32.gmra.mrb[20].mxu1 %vm487_vm4, %v1310_v41  ;;  %v1334_v41 = vld [vmem:[%s2179_s13] ss:$0 sm:$0xff]  ;;  %vm1096_vm4 = vcmask 523264  }
 0x378   :  { %1512 = vmatprep.mubr.msk.f32.mxu1 %vm1700_vm1, %v1699_v2 }
 0x442   :  { %v1493_v43 = vpop.f32.mrb[16].mxu1 }
 0x443   :  { %v857_v44 = vadd.f32 1e-16, %v1493_v43  ;;  %v851_v45 = vpop.f32.mrb[17].mxu1 }
 0x444   :  { %v852_v46 = vadd.f32 1e-16, %v851_v45 }
 0x445   :  { %1651 = vrcp.f32 %v857_v44 }
 0x446   :  { %1653 = vrcp.f32 %v852_v46  ;;  %v1496_v47 = vpop.f32.mrb[18].mxu1 }
 0x447   :  { %v867_v7 = vadd.f32 1e-16, %v1496_v47  ;;  %v861_v48 = vpop.f32.mrb[19].mxu1 }
 0x448   :  { %v862_v49 = vadd.f32 1e-16, %v861_v48 }
 0x449   :  { %1655 = vrcp.f32 %v867_v7 }
 0x44a   :  { %1657 = vrcp.f32 %v862_v49  ;;  %v1499_v50 = vpop.f32.mrb[20].mxu1 }
 0x44b   :  { %v877_v51 = vadd.f32 1e-16, %v1499_v50  ;;  %v871_v52 = vpop.f32.mrb[21].mxu1  ;;  %v1338_v50 = vld [vmem:[%s2181_s15] ss:$0 sm:$0xff] }
 0x44c   :  { %v872_v53 = vadd.f32 1e-16, %v871_v52 }
 0x44d   :  { %1659 = vrcp.f32 %v877_v51 }
 0x44e   :  { %1661 = vrcp.f32 %v872_v53 }
 0x44f   :  { %v1652_v55 = vpop.eup %1651 }
 0x450   :  { %v1654_v56 = vpop.eup %1653  ;;  %v883_v57 = vmul.f32 %v1652_v55, %v1990_v60 }
 0x451   :  { %v881_v59 = vmul.f32 %v1654_v56, %v1988_v62 }
 0x452   :  { %v893_v61 = vmul.f32 %v883_v57, %v1913_v54 }
 0x453   :  { %v1656_v63 = vpop.eup %1655  ;;  %v892_v1 = vmul.f32 %v881_v59, %v1915_v58 }
 0x454   :  { %v1658_v6 = vpop.eup %1657  ;;  %v887_v9 = vmul.f32 %v1656_v63, %v1996_v5 }
 0x455   :  { %v1581_v10 = vpack.c.bf16 %v893_v61, %v892_v1  ;;  %v885_v16 = vmul.f32 %v1658_v6, %v1992_v0  ;;  %v1081_v0 = vld [vmem:[%s2180_s14] sm:$0xff] }
 0x456   :  { %v895_v17 = vmul.f32 %v887_v9, %v1927_v12 }
 0x457   :  { %v1660_v18 = vpop.eup %1659  ;;  %1582 = vmatpush3.bf16.msra.mxu1 %v1581_v10  ;;  %v894_v20 = vmul.f32 %v885_v16, %v1931_v14  ;;  %v981_v14 = vld [vmem:[%s2178_s12 + $0x18] sm:$0xff] }
 0x458   :  { %v1662_v60 = vpop.eup %1661  ;;  %1583 = vmatprep.subr.bf16.mxu1 %v1702_v33  ;;  %v891_v54 = vmul.f32 %v1660_v18, %v2007_v11  ;;  %v1287_v11 = vld [vmem:[%s2174_s8] ss:$0 sm:$0xff] }
 0x459   :  { %v1584_v62 = vpack.c.bf16 %v895_v17, %v894_v20  ;;  %v889_v58 = vmul.f32 %v1662_v60, %v2000_v8  ;;  %v1082_v8 = vld [vmem:[%s2180_s14 + $0x8] sm:$0xff] }
 0x45a   :  { %v897_v24 = vmul.f32 %v891_v54, %v1929_v13  ;;  %v980_v13 = vld [vmem:[%s2178_s12 + $0x10] sm:$0xff] }
 0x45b   :  { %1585 = vmatpush3.bf16.msra.mxu1 %v1584_v62  ;;  %v896_v5 = vmul.f32 %v889_v58, %v1933_v15  ;;  %v1593_v15 = vpack.c.bf16 %v981_v14, %v980_v13 }
 0x45c   :  { %1586 = vmatprep.subr.bf16.mxu1 %v1702_v33 }
 0x45d   :  { %v1587_v12 = vpack.c.bf16 %v897_v24, %v896_v5  ;;  %1594 = vmatpush3.bf16.msra.mxu0 %v1593_v15 }
 0x45e   :  { %1595 = vmatprep.subr.bf16.mxu0 %v1702_v33 }
 0x45f   :  { %1588 = vmatpush3.bf16.msra.mxu1 %v1587_v12 }
 0x462   :  { %1513 = vmatmul.mubr.msk.f32.vlgmr.msra.gmra.mrb[4].mxu1 %vm677_vm13, %v2013_v21 }
 0x463   :  { %1515 = vmatprep.mubr.msk.f32.mxu1 %vm1700_vm1, %v1699_v2 }
 0x466   :  { %1516 = vmatmul.mubr.msk.f32.gmra.mrb[6].mxu1 %vm677_vm13, %v2020_v19  ;;  %v1596_v19 = vpack.c.bf16 %v1082_v8, %v1081_v0 }
 0x467   :  { %1518 = vmatprep.mubr.msk.f32.mxu1 %vm1700_vm1, %v1699_v2 }
 0x46a   :  { %1519 = vmatmul.mubr.msk.f32.gmra.mrb[8].mxu1 %vm677_vm13, %v2028_v23 }
 0x535   :  { %v964_v21 = vpop.f32.mrb[4].mxu1 }
 0x536   :  { %v1609_v23 = vadd.f32 %v1287_v11, %v964_v21  ;;  %v1514_v25 = vpop.f32.mrb[5].mxu1 }
 0x538   :  { %1530 = vmatmul.mubr.msk.f32.vlgmr.msra.gmra.mrb[8].mxu0 %vm629_vm11, %v1609_v23 }
 0x539   :  { %v969_v28 = vpop.f32.mrb[6].mxu1  ;;  %1532 = vmatprep.mubr.msk.f32.mxu0 %vm1700_vm1, %v1699_v2  ;;  %1597 = vmatpush3.bf16.msra.mxu0 %v1596_v19 }
 0x53a   :  { %v1610_v30 = vadd.f32 %v1287_v11, %v969_v28  ;;  %v1517_v31 = vpop.f32.mrb[7].mxu1  ;;  %1598 = vmatprep.subr.bf16.mxu0 %v1702_v33  ;;  %v1342_v28 = vld [vmem:[%s2182_s16] ss:$0 sm:$0xff]  ;;  %s1703_s16 = smov [#allocation3]  }
 0x53c   :  { %1533 = vmatmul.mubr.msk.f32.gmra.mrb[10].mxu0 %vm629_vm11, %v1610_v30  ;;  %v1343_v30 = vld [vmem:[%s2183_s17] ss:$0 sm:$0xff]  ;;  %s1272_s17 = sshll.u32 %s1703_s16, 4  ;;  %s1273_s17 = int_to_ptr.vmem [resolvable:$true] %s1272_s17 }
 0x53d   :  { %v974_v35 = vpop.f32.mrb[8].mxu1  ;;  %1535 = vmatprep.mubr.msk.f32.mxu0 %vm1700_vm1, %v1699_v2  ;;  %1600 = vmatpush3.bf16.msra.mxu0 %v1599_v29  ;;  %s1675_s10 = scalar_lea.vmem %s1273_s17, 384  ;;  %p1680_p1 = scmp.lt.s32.totalorder %s1273_s17, %s1273_s17 }
 0x53e   :  { %v1611_v36 = vadd.f32 %v1287_v11, %v974_v35  ;;  %v1520_v37 = vpop.f32.mrb[9].mxu1  ;;  %1601 = vmatprep.subr.bf16.mxu0 %v1702_v33  ;;  %p1676_p0 = scmp.ne.s32.totalorder %s1273_s17, %s1675_s10  ;;  %p1681_p2 = scmp.lt.s32.totalorder %s1675_s10, %s1675_s10 }
 0x540   :  { %1536 = vmatmul.mubr.msk.f32.gmra.mrb[12].mxu0 %vm629_vm11, %v1611_v36  ;;  %p1682_p3 = por %p1681_p2, %p1680_p1 }
 0x541   :  { %1603 = vmatpush3.bf16.msra.mxu0 %v1602_v3  ;;  %1554 = vmatprep.mubr.msk.f32.mxu0 %vm1700_vm1, %v1699_v2 }
 0x542   :  { %1604 = vmatprep.subr.bf16.mxu0 %v1702_v33  ;;  %p1683_p4 = pnand %p1682_p3, %p1676_p0 }
 0x545   :  { %1606 = vmatpush3.bf16.msra.mxu0 %v1605_v40 }
 0x60b   :  { %v1064_v42 = vpop.f32.mrb[8].mxu0 }
 0x60c   :  { %v1065_v4 = vadd.f32 %v1334_v41, %v1064_v42  ;;  %v1531_v22 = vpop.f32.mrb[9].mxu0 }
 0x60e   :  { %v1078_v43 = vmax.f32 %v1065_v4, 0.0 }
 0x60f   :  { %v1069_v33 = vpop.f32.mrb[10].mxu0 }
 0x610   :  { %v1070_v44 = vadd.f32 %v1334_v41, %v1069_v33  ;;  %v1534_v45 = vpop.f32.mrb[11].mxu0  ;;  %1555 = vmatmul.mubr.msk.f32.vlgmr.msra.gmra.mrb[14].mxu0 %vm1096_vm4, %v1078_v43 }
 0x611   :  { %1557 = vmatprep.mubr.msk.f32.mxu0 %vm1700_vm1, %v1699_v2 }
 0x612   :  { %v1079_v46 = vmax.f32 %v1070_v44, 0.0 }
 0x613   :  { %v1074_v47 = vpop.f32.mrb[12].mxu0 }
 0x614   :  { %v1075_v7 = vadd.f32 %v1334_v41, %v1074_v47  ;;  %v1537_v48 = vpop.f32.mrb[13].mxu0  ;;  %1558 = vmatmul.mubr.msk.f32.gmra.mrb[16].mxu0 %vm1096_vm4, %v1079_v46 }
 0x615   :  { %1560 = vmatprep.mubr.msk.f32.mxu0 %vm1700_vm1, %v1699_v2 }
 0x616   :  { %v1080_v49 = vmax.f32 %v1075_v7, 0.0 }
 0x618   :  { %1561 = vmatmul.mubr.msk.f32.gmra.mrb[18].mxu0 %vm1096_vm4, %v1080_v49 }
 0x6e3   :  { %v1172_v51 = vpop.f32.mrb[14].mxu0 }
 0x6e4   :  { %v1173_v52 = vadd.f32 %v1338_v50, %v1172_v51  ;;  %v1556_v53 = vpop.f32.mrb[15].mxu0 }
 0x6e6   :  { %v1188_v55 = vsel %vm629_vm11, %v1173_v52, 0.0 }
 0x6e7   :  { %1189 = vadd.xlane.f32.xlu1 %v1188_v55  ;;  %v1177_v56 = vpop.f32.mrb[16].mxu0 }
 0x6e8   :  { %v1178_v57 = vadd.f32 %v1338_v50, %v1177_v56  ;;  %v1559_v59 = vpop.f32.mrb[17].mxu0 }
 0x6ea   :  { %v1191_v61 = vsel %vm629_vm11, %v1178_v57, 0.0 }
 0x6eb   :  { %1192 = vadd.xlane.f32.xlu0 %v1191_v61  ;;  %v1182_v63 = vpop.f32.mrb[18].mxu0 }
 0x6ec   :  { %v1183_v2 = vadd.f32 %v1338_v50, %v1182_v63  ;;  %v1562_v1 = vpop.f32.mrb[19].mxu0 }
 0x6ee   :  { %v1194_v6 = vsel %vm629_vm11, %v1183_v2, 0.0 }
 0x6ef   :  { %1195 = vadd.xlane.f32.xlu0 %v1194_v6 }
 0x774   :  { %v1190_v9 = vpop.xlane.xlu1 %1189 }
 0x775   :  { %v1198_v10 = vmul.f32 0.03125, %v1190_v9 }
 0x777   :  { %v1201_v16 = vsub.f32 %v1173_v52, %v1198_v10 }
 0x778   :  { %v1193_v17 = vpop.xlane.xlu0 %1192 }
 0x779   :  { %v1199_v18 = vmul.f32 0.03125, %v1193_v17  ;;  %v1204_v20 = vmul.f32 %v1201_v16, %v1201_v16 }
 0x77b   :  { %v1202_v60 = vsub.f32 %v1178_v57, %v1199_v18  ;;  %v1207_v54 = vsel %vm629_vm11, %v1204_v20, 0.0 }
 0x77c   :  { %1208 = vadd.xlane.f32.xlu1 %v1207_v54  ;;  %v1196_v62 = vpop.xlane.xlu0 %1195 }
 0x77d   :  { %v1200_v58 = vmul.f32 0.03125, %v1196_v62  ;;  %v1205_v24 = vmul.f32 %v1202_v60, %v1202_v60 }
 0x77f   :  { %v1203_v5 = vsub.f32 %v1183_v2, %v1200_v58  ;;  %v1210_v12 = vsel %vm629_vm11, %v1205_v24, 0.0 }
 0x780   :  { %1211 = vadd.xlane.f32.xlu0 %v1210_v12 }
 0x781   :  { %v1206_v13 = vmul.f32 %v1203_v5, %v1203_v5 }
 0x783   :  { %v1213_v14 = vsel %vm629_vm11, %v1206_v13, 0.0 }
 0x784   :  { %1214 = vadd.xlane.f32.xlu1 %v1213_v14 }
 0x809   :  { %v1209_v15 = vpop.xlane.xlu1 %1208 }
 0x80a   :  { %v1216_v0 = vmul.f32 0.03125, %v1209_v15 }
 0x80c   :  { %v1219_v8 = vadd.f32 1e-05, %v1216_v0 }
 0x80d   :  { %v1212_v11 = vpop.xlane.xlu0 %1211 }
 0x80e   :  { %1663 = vrsqrt.f32 %v1219_v8  ;;  %v1217_v21 = vmul.f32 0.03125, %v1212_v11 }
 0x810   :  { %v1220_v19 = vadd.f32 1e-05, %v1217_v21 }
 0x811   :  { %v1215_v23 = vpop.xlane.xlu1 %1214 }
 0x812   :  { %1665 = vrsqrt.f32 %v1220_v19  ;;  %v1218_v25 = vmul.f32 0.03125, %v1215_v23 }
 0x814   :  { %v1221_v26 = vadd.f32 1e-05, %v1218_v25 }
 0x816   :  { %1667 = vrsqrt.f32 %v1221_v26 }
 0x818   :  { %v1664_v27 = vpop.eup %1663 }
 0x819   :  { %v1225_v29 = vmul.f32 %v1664_v27, %v1201_v16 }
 0x81b   :  { %v1234_v31 = vmul.f32 %v1342_v28, %v1225_v29 }
 0x81c   :  { %v1666_v32 = vpop.eup %1665 }
 0x81d   :  { %v1243_v34 = vadd.f32 %v1343_v30, %v1234_v31  ;;  %v1226_v35 = vmul.f32 %v1666_v32, %v1202_v60 }
 0x81f   :  { %v1235_v3 = vmul.f32 %v1342_v28, %v1226_v35  ;;  %v1249_v36 = vmin.f32 %v1243_v34, 0.0  ;;  %vm1246_vm1 = vcmp.gt.f32.partialorder %v1243_v34, 0.0 }
 0x820   :  { %v1668_v37 = vpop.eup %1667 }
 0x821   :  { %v1244_v38 = vadd.f32 %v1343_v30, %v1235_v3  ;;  %v1227_v39 = vmul.f32 %v1668_v37, %v1203_v5  ;;  %v1252_v40 = vmul.f32 1.442695, %v1249_v36 }
 0x823   :  { %v1250_v41 = vmin.f32 %v1244_v38, 0.0  ;;  %v1236_v42 = vmul.f32 %v1342_v28, %v1227_v39  ;;  %1669 = vpow2.f32 %v1252_v40  ;;  %vm1247_vm8 = vcmp.gt.f32.partialorder %v1244_v38, 0.0 }
 0x825   :  { %v1245_v4 = vadd.f32 %v1343_v30, %v1236_v42  ;;  %v1254_v22 = vmul.f32 1.442695, %v1250_v41 }
 0x827   :  { %v1251_v43 = vmin.f32 %v1245_v4, 0.0  ;;  %1671 = vpow2.f32 %v1254_v22  ;;  %vm1248_vm9 = vcmp.gt.f32.partialorder %v1245_v4, 0.0 }
 0x829   :  { %v1256_v33 = vmul.f32 1.442695, %v1251_v43 }
 0x82b   :  { %1673 = vpow2.f32 %v1256_v33 }
 0x82d   :  { %v1670_v44 = vpop.eup %1669 }
 0x82e   :  { %v1344_v45 = vadd.f32 -1.0, %v1670_v44 }
 0x830   :  { %v1261_v46 = vsel %vm1246_vm1, %v1243_v34, %v1344_v45 }
 0x831   :  { %v1672_v47 = vpop.eup %1671  ;;  %1264 = vst.msk [vmem:[#allocation3] sm:$0xff] %vm629_vm11, %v1261_v46 }
 0x832   :  { %v1345_v7 = vadd.f32 -1.0, %v1672_v47 }
 0x834   :  { %v1262_v48 = vsel %vm1247_vm8, %v1244_v38, %v1345_v7 }
 0x835   :  { %v1674_v49 = vpop.eup %1673  ;;  %1265 = vst.msk [vmem:[#allocation3 + $0x8] sm:$0xff] %vm629_vm11, %v1262_v48 }
 0x836   :  { %v1346_v50 = vadd.f32 -1.0, %v1674_v49 }
 0x838   :  { %v1263_v51 = vsel %vm1248_vm9, %v1245_v4, %v1346_v50 }
 0x839   :  { %1266 = vst.msk [vmem:[#allocation3 + $0x10] sm:$0xff] %vm629_vm11, %v1263_v51 }
 0x83a   :  { %1686 = shalt.err (!%p1683_p4)
}
 0x83b   :  { %s1687_s20 = scalar_lea.hbm %s2184_s18, 384 }
 0x83c   :  { %p1688_p5 = scmp.ne.s32.totalorder %s2184_s18, %s1687_s20  ;;  %p1691_p6 = scmp.lt.u32.totalorder %s1687_s20, %s2184_s18 }
 0x83e   :  { %p1693_p7 = pnand %p1691_p6, %p1688_p5 }
 0x840   :  { %1696 = shalt.err (!%p1693_p7)
}
 0x841   :  { %s1704_s12 = smov 128   ;;  %s1705_s23 = smov 8  }
 0x842   :  { %1278 = dma.vmem_to_hbm [thread:$0]  %s1273_s17, 384, %s2184_s18, [#allocation4], %s1704_s12, %s1704_s12, %s1705_s23  }
 0x843   :  { %1697 = dma.done.wait [#allocation4], 384  }
 0x844   :  { %1698 = vsyncadd [#allocation4], 4294966912 }
 0x845   :  { %1282 = vsyncpa [#allocation4], 1 }

</bundles_post_ra>
